<compile_context>
chip_gen: v7x
topology: tpu7x:2x2x1
jax: 0.10.0
libtpu: 0.0.40
codegen_flags: <defaults>
</compile_context>

<pallas_src>
import math
import jax
import jax.numpy as jnp
from jax.experimental import pallas as pl
from jax.experimental.pallas import tpu as pltpu


# ----------------------------------------------------------------------------
# Fused multi-layer LSTM + final Linear kernel (single invocation, no grid)
# ----------------------------------------------------------------------------
def _make_fused_kernel(num_layers, hidden_size):
    H = hidden_size

    def kernel(*refs):
        # refs = [x_ref, (w_l, b_l) * num_layers, w_fc, b_fc, out_ref]
        x_ref = refs[0]
        w_refs = [refs[1 + 2 * l] for l in range(num_layers)]
        b_refs = [refs[2 + 2 * l] for l in range(num_layers)]
        wfc_ref = refs[1 + 2 * num_layers]
        bfc_ref = refs[2 + 2 * num_layers]
        out_ref = refs[3 + 2 * num_layers]

        T, B, _ = x_ref.shape

        # Load weights once; hoist bias broadcasts out of the unrolled loop.
        Ws = [w_refs[l][...] for l in range(num_layers)]           # (in_l + H, 4H)
        Bs = [jnp.broadcast_to(b_refs[l][...], (B, 4 * H))          # (B, 4H)
              for l in range(num_layers)]

        # Recurrent state lives in vregs across the unrolled loop.
        h = [jnp.zeros((B, H), jnp.float32) for _ in range(num_layers)]
        c = [jnp.zeros((B, H), jnp.float32) for _ in range(num_layers)]

        # Unrolled time loop: no grid steps, no per-step HBM traffic.
        for t in range(T):
            inp = x_ref[t]                                          # (B, in_0), static slice
            for l in range(num_layers):
                # Single fused gate matmul: [x_t, h_{t-1}] @ [W_ih; W_hh] + b
                xh = jnp.concatenate([inp, h[l]], axis=-1)          # (B, in_l + H)
                gates = (
                    jnp.dot(xh, Ws[l], preferred_element_type=jnp.float32)
                    + Bs[l]
                )                                                   # (B, 4H), 4H = 128 lanes
                i_g = jax.nn.sigmoid(gates[:, 0 * H:1 * H])
                f_g = jax.nn.sigmoid(gates[:, 1 * H:2 * H])
                g_g = jnp.tanh(gates[:, 2 * H:3 * H])
                o_g = jax.nn.sigmoid(gates[:, 3 * H:4 * H])
                c[l] = f_g * c[l] + i_g * g_g
                h[l] = o_g * jnp.tanh(c[l])
                inp = h[l]

        # Final Linear on the last timestep's top-layer hidden state.
        out = (
            jnp.dot(h[-1], wfc_ref[...], preferred_element_type=jnp.float32)
            + bfc_ref[...]
        )
        out_ref[...] = out.astype(out_ref.dtype)

    return kernel


def model_forward(params, x, hidden_size, num_layers):
    """x: (B, T, input_size) batch-first (PyTorch convention) -> (B, output_size)."""
    B, _, _ = x.shape
    O = params["fc"]["w"].shape[1]
    x_tm = jnp.transpose(x, (1, 0, 2))  # time-major (T, B, I): contiguous per-t slabs

    args = [x_tm]
    for lp in params["lstm"]:
        args.append(lp["w"])
        args.append(lp["b"])
    args.append(params["fc"]["w"])
    args.append(params["fc"]["b"])

    kernel = _make_fused_kernel(num_layers, hidden_size)
    return pl.pallas_call(
        kernel,
        out_shape=jax.ShapeDtypeStruct((B, O), jnp.float32),
        in_specs=[pl.BlockSpec(memory_space=pltpu.MemorySpace.VMEM) for _ in args],
        out_specs=pl.BlockSpec(memory_space=pltpu.MemorySpace.VMEM),
    )(*args)


# ----------------------------------------------------------------------------
# Parameter init (deterministic, PyTorch-style uniform(-1/sqrt(H), 1/sqrt(H)))
# W_ih / W_hh are fused at init time into a single (in_dim + H, 4H) matrix.
# ----------------------------------------------------------------------------
def init_params(key, input_size, hidden_size, output_size, num_layers):
    k = 1.0 / math.sqrt(hidden_size)
    params = {"lstm": [], "fc": None}
    for layer in range(num_layers):
        in_dim = input_size if layer == 0 else hidden_size
        key, k1, k2, k3, k4 = jax.random.split(key, 5)
        w_ih = jax.random.uniform(k1, (4 * hidden_size, in_dim), jnp.float32, -k, k)
        w_hh = jax.random.uniform(k2, (4 * hidden_size, hidden_size), jnp.float32, -k, k)
        b_ih = jax.random.uniform(k3, (4 * hidden_size,), jnp.float32, -k, k)
        b_hh = jax.random.uniform(k4, (4 * hidden_size,), jnp.float32, -k, k)
        w = jnp.concatenate([w_ih.T, w_hh.T], axis=0)               # (in_dim + H, 4H)
        params["lstm"].append(
            {"w": w, "b": (b_ih + b_hh).reshape(1, 4 * hidden_size)}
        )
    key, k1, k2 = jax.random.split(key, 3)
    w_fc = jax.random.uniform(k1, (output_size, hidden_size), jnp.float32, -k, k)
    b_fc = jax.random.uniform(k2, (output_size,), jnp.float32, -k, k)
    params["fc"] = {"w": w_fc.T, "b": b_fc.reshape(1, output_size)}
    return params


# ----------------------------------------------------------------------------
# Pure-JAX reference (same math: concat([x,h]) @ [Wih;Whh] == x@Wih + h@Whh)
# ----------------------------------------------------------------------------
def reference_forward(params, x, hidden_size, num_layers):
    B, T, _ = x.shape
    H = hidden_size
    seq = x
    for lp in params["lstm"]:
        w, b = lp["w"], lp["b"][0]

        def step(carry, x_t, w=w, b=b):
            h_prev, c_prev = carry
            gates = jnp.concatenate([x_t, h_prev], axis=-1) @ w + b
            i = jax.nn.sigmoid(gates[:, 0 * H:1 * H])
            f = jax.nn.sigmoid(gates[:, 1 * H:2 * H])
            g = jnp.tanh(gates[:, 2 * H:3 * H])
            o = jax.nn.sigmoid(gates[:, 3 * H:4 * H])
            c_new = f * c_prev + i * g
            h_new = o * jnp.tanh(c_new)
            return (h_new, c_new), h_new

        init = (jnp.zeros((B, H), jnp.float32), jnp.zeros((B, H), jnp.float32))
        _, hs = jax.lax.scan(step, init, jnp.transpose(seq, (1, 0, 2)))
        seq = jnp.transpose(hs, (1, 0, 2))
    last = seq[:, -1, :]
    return last @ params["fc"]["w"] + params["fc"]["b"]


if __name__ == "__main__":
    input_size, hidden_size, output_size, num_layers = 16, 32, 8, 2
    B, T = 4, 8

    key = jax.random.PRNGKey(0)
    key, pkey, xkey = jax.random.split(key, 3)
    params = init_params(pkey, input_size, hidden_size, output_size, num_layers)
    x = jax.random.normal(xkey, (B, T, input_size), jnp.float32)

    out = model_forward(params, x, hidden_size, num_layers)
    jax.block_until_ready(out)
    assert out.shape == (B, output_size)

    ref = reference_forward(params, x, hidden_size, num_layers)
    jax.block_until_ready(ref)
    assert jnp.allclose(out, ref, atol=1e-3, rtol=1e-3), "mismatch vs reference"

    print("KERNEL_OK")
</pallas_src>

<mosaic_0001>
module attributes {stable_mosaic.version = 11 : i64} {
  func.func @kernel(%arg0: memref<8x4x16xf32, #tpu.memory_space<vmem>>, %arg1: memref<48x128xf32, #tpu.memory_space<vmem>>, %arg2: memref<1x128xf32, #tpu.memory_space<vmem>>, %arg3: memref<64x128xf32, #tpu.memory_space<vmem>>, %arg4: memref<1x128xf32, #tpu.memory_space<vmem>>, %arg5: memref<32x8xf32, #tpu.memory_space<vmem>>, %arg6: memref<1x8xf32, #tpu.memory_space<vmem>>, %arg7: memref<4x8xf32, #tpu.memory_space<vmem>>) attributes {dimension_semantics = [], scalar_prefetch = 0 : i64, scratch_operands = 0 : i64, tpu.core_type = #tpu.core_type<tc>} {
    %c0 = arith.constant 0 : index
    %c0_0 = arith.constant 0 : index
    %0 = vector.load %arg1[%c0, %c0_0] : memref<48x128xf32, #tpu.memory_space<vmem>>, vector<48x128xf32>
    %c0_1 = arith.constant 0 : index
    %c0_2 = arith.constant 0 : index
    %1 = vector.load %arg3[%c0_1, %c0_2] : memref<64x128xf32, #tpu.memory_space<vmem>>, vector<64x128xf32>
    %c0_3 = arith.constant 0 : index
    %c0_4 = arith.constant 0 : index
    %2 = vector.load %arg2[%c0_3, %c0_4] : memref<1x128xf32, #tpu.memory_space<vmem>>, vector<1x128xf32>
    %3 = vector.shape_cast %2 : vector<1x128xf32> to vector<1x128xf32>
    %4 = vector.broadcast %3 : vector<1x128xf32> to vector<4x128xf32>
    %c0_5 = arith.constant 0 : index
    %c0_6 = arith.constant 0 : index
    %5 = vector.load %arg4[%c0_5, %c0_6] : memref<1x128xf32, #tpu.memory_space<vmem>>, vector<1x128xf32>
    %6 = vector.shape_cast %5 : vector<1x128xf32> to vector<1x128xf32>
    %7 = vector.broadcast %6 : vector<1x128xf32> to vector<4x128xf32>
    %cst = arith.constant 0.000000e+00 : f32
    %8 = vector.broadcast %cst : f32 to vector<4x32xf32>
    %cst_7 = arith.constant 0.000000e+00 : f32
    %9 = vector.broadcast %cst_7 : f32 to vector<4x32xf32>
    %cst_8 = arith.constant 0.000000e+00 : f32
    %10 = vector.broadcast %cst_8 : f32 to vector<4x32xf32>
    %cst_9 = arith.constant 0.000000e+00 : f32
    %11 = vector.broadcast %cst_9 : f32 to vector<4x32xf32>
    %c0_10 = arith.constant 0 : index
    %c0_11 = arith.constant 0 : index
    %c0_12 = arith.constant 0 : index
    %12 = vector.load %arg0[%c0_10, %c0_11, %c0_12] : memref<8x4x16xf32, #tpu.memory_space<vmem>>, vector<1x4x16xf32>
    %13 = vector.shape_cast %12 : vector<1x4x16xf32> to vector<4x16xf32>
    %14 = tpu.concatenate %13, %8 in 1 : vector<4x16xf32>, vector<4x32xf32> -> vector<4x48xf32>
    %cst_13 = arith.constant dense<0.000000e+00> : vector<4x128xf32>
    %15 = tpu.matmul %14, %0, %cst_13 {dimension_numbers = #tpu.dot_dimension_numbers<[1], [0], [0], [1], [0, 0, 1, 1], [], []>} : vector<4x48xf32>, vector<48x128xf32>, vector<4x128xf32> -> vector<4x128xf32>
    %16 = arith.addf %15, %4 : vector<4x128xf32>
    %17 = vector.extract_strided_slice %16 {offsets = [0, 0], sizes = [4, 32], strides = [1, 1]} : vector<4x128xf32> to vector<4x32xf32>
    %18 = arith.negf %17 : vector<4x32xf32>
    %19 = math.exp %18 : vector<4x32xf32>
    %cst_14 = arith.constant 1.000000e+00 : f32
    %20 = vector.broadcast %cst_14 : f32 to vector<4x32xf32>
    %21 = arith.addf %20, %19 : vector<4x32xf32>
    %22 = arith.divf %20, %21 : vector<4x32xf32>
    %23 = vector.extract_strided_slice %16 {offsets = [0, 32], sizes = [4, 32], strides = [1, 1]} : vector<4x128xf32> to vector<4x32xf32>
    %24 = arith.negf %23 : vector<4x32xf32>
    %25 = math.exp %24 : vector<4x32xf32>
    %cst_15 = arith.constant 1.000000e+00 : f32
    %26 = vector.broadcast %cst_15 : f32 to vector<4x32xf32>
    %27 = arith.addf %26, %25 : vector<4x32xf32>
    %28 = arith.divf %26, %27 : vector<4x32xf32>
    %29 = vector.extract_strided_slice %16 {offsets = [0, 64], sizes = [4, 32], strides = [1, 1]} : vector<4x128xf32> to vector<4x32xf32>
    %30 = math.tanh %29 : vector<4x32xf32>
    %31 = vector.extract_strided_slice %16 {offsets = [0, 96], sizes = [4, 32], strides = [1, 1]} : vector<4x128xf32> to vector<4x32xf32>
    %32 = arith.negf %31 : vector<4x32xf32>
    %33 = math.exp %32 : vector<4x32xf32>
    %cst_16 = arith.constant 1.000000e+00 : f32
    %34 = vector.broadcast %cst_16 : f32 to vector<4x32xf32>
    %35 = arith.addf %34, %33 : vector<4x32xf32>
    %36 = arith.divf %34, %35 : vector<4x32xf32>
    %37 = arith.mulf %28, %10 : vector<4x32xf32>
    %38 = arith.mulf %22, %30 : vector<4x32xf32>
    %39 = arith.addf %37, %38 : vector<4x32xf32>
    %40 = math.tanh %39 : vector<4x32xf32>
    %41 = arith.mulf %36, %40 : vector<4x32xf32>
    %42 = tpu.concatenate %41, %9 in 1 : vector<4x32xf32>, vector<4x32xf32> -> vector<4x64xf32>
    %cst_17 = arith.constant dense<0.000000e+00> : vector<4x128xf32>
    %43 = tpu.matmul %42, %1, %cst_17 {dimension_numbers = #tpu.dot_dimension_numbers<[1], [0], [0], [1], [0, 0, 1, 1], [], []>} : vector<4x64xf32>, vector<64x128xf32>, vector<4x128xf32> -> vector<4x128xf32>
    %44 = arith.addf %43, %7 : vector<4x128xf32>
    %45 = vector.extract_strided_slice %44 {offsets = [0, 0], sizes = [4, 32], strides = [1, 1]} : vector<4x128xf32> to vector<4x32xf32>
    %46 = arith.negf %45 : vector<4x32xf32>
    %47 = math.exp %46 : vector<4x32xf32>
    %cst_18 = arith.constant 1.000000e+00 : f32
    %48 = vector.broadcast %cst_18 : f32 to vector<4x32xf32>
    %49 = arith.addf %48, %47 : vector<4x32xf32>
    %50 = arith.divf %48, %49 : vector<4x32xf32>
    %51 = vector.extract_strided_slice %44 {offsets = [0, 32], sizes = [4, 32], strides = [1, 1]} : vector<4x128xf32> to vector<4x32xf32>
    %52 = arith.negf %51 : vector<4x32xf32>
    %53 = math.exp %52 : vector<4x32xf32>
    %cst_19 = arith.constant 1.000000e+00 : f32
    %54 = vector.broadcast %cst_19 : f32 to vector<4x32xf32>
    %55 = arith.addf %54, %53 : vector<4x32xf32>
    %56 = arith.divf %54, %55 : vector<4x32xf32>
    %57 = vector.extract_strided_slice %44 {offsets = [0, 64], sizes = [4, 32], strides = [1, 1]} : vector<4x128xf32> to vector<4x32xf32>
    %58 = math.tanh %57 : vector<4x32xf32>
    %59 = vector.extract_strided_slice %44 {offsets = [0, 96], sizes = [4, 32], strides = [1, 1]} : vector<4x128xf32> to vector<4x32xf32>
    %60 = arith.negf %59 : vector<4x32xf32>
    %61 = math.exp %60 : vector<4x32xf32>
    %cst_20 = arith.constant 1.000000e+00 : f32
    %62 = vector.broadcast %cst_20 : f32 to vector<4x32xf32>
    %63 = arith.addf %62, %61 : vector<4x32xf32>
    %64 = arith.divf %62, %63 : vector<4x32xf32>
    %65 = arith.mulf %56, %11 : vector<4x32xf32>
    %66 = arith.mulf %50, %58 : vector<4x32xf32>
    %67 = arith.addf %65, %66 : vector<4x32xf32>
    %68 = math.tanh %67 : vector<4x32xf32>
    %69 = arith.mulf %64, %68 : vector<4x32xf32>
    %c1 = arith.constant 1 : index
    %c0_21 = arith.constant 0 : index
    %c0_22 = arith.constant 0 : index
    %70 = vector.load %arg0[%c1, %c0_21, %c0_22] : memref<8x4x16xf32, #tpu.memory_space<vmem>>, vector<1x4x16xf32>
    %71 = vector.shape_cast %70 : vector<1x4x16xf32> to vector<4x16xf32>
    %72 = tpu.concatenate %71, %41 in 1 : vector<4x16xf32>, vector<4x32xf32> -> vector<4x48xf32>
    %cst_23 = arith.constant dense<0.000000e+00> : vector<4x128xf32>
    %73 = tpu.matmul %72, %0, %cst_23 {dimension_numbers = #tpu.dot_dimension_numbers<[1], [0], [0], [1], [0, 0, 1, 1], [], []>} : vector<4x48xf32>, vector<48x128xf32>, vector<4x128xf32> -> vector<4x128xf32>
    %74 = arith.addf %73, %4 : vector<4x128xf32>
    %75 = vector.extract_strided_slice %74 {offsets = [0, 0], sizes = [4, 32], strides = [1, 1]} : vector<4x128xf32> to vector<4x32xf32>
    %76 = arith.negf %75 : vector<4x32xf32>
    %77 = math.exp %76 : vector<4x32xf32>
    %cst_24 = arith.constant 1.000000e+00 : f32
    %78 = vector.broadcast %cst_24 : f32 to vector<4x32xf32>
    %79 = arith.addf %78, %77 : vector<4x32xf32>
    %80 = arith.divf %78, %79 : vector<4x32xf32>
    %81 = vector.extract_strided_slice %74 {offsets = [0, 32], sizes = [4, 32], strides = [1, 1]} : vector<4x128xf32> to vector<4x32xf32>
    %82 = arith.negf %81 : vector<4x32xf32>
    %83 = math.exp %82 : vector<4x32xf32>
    %cst_25 = arith.constant 1.000000e+00 : f32
    %84 = vector.broadcast %cst_25 : f32 to vector<4x32xf32>
    %85 = arith.addf %84, %83 : vector<4x32xf32>
    %86 = arith.divf %84, %85 : vector<4x32xf32>
    %87 = vector.extract_strided_slice %74 {offsets = [0, 64], sizes = [4, 32], strides = [1, 1]} : vector<4x128xf32> to vector<4x32xf32>
    %88 = math.tanh %87 : vector<4x32xf32>
    %89 = vector.extract_strided_slice %74 {offsets = [0, 96], sizes = [4, 32], strides = [1, 1]} : vector<4x128xf32> to vector<4x32xf32>
    %90 = arith.negf %89 : vector<4x32xf32>
    %91 = math.exp %90 : vector<4x32xf32>
    %cst_26 = arith.constant 1.000000e+00 : f32
    %92 = vector.broadcast %cst_26 : f32 to vector<4x32xf32>
    %93 = arith.addf %92, %91 : vector<4x32xf32>
    %94 = arith.divf %92, %93 : vector<4x32xf32>
    %95 = arith.mulf %86, %39 : vector<4x32xf32>
    %96 = arith.mulf %80, %88 : vector<4x32xf32>
    %97 = arith.addf %95, %96 : vector<4x32xf32>
    %98 = math.tanh %97 : vector<4x32xf32>
    %99 = arith.mulf %94, %98 : vector<4x32xf32>
    %100 = tpu.concatenate %99, %69 in 1 : vector<4x32xf32>, vector<4x32xf32> -> vector<4x64xf32>
    %cst_27 = arith.constant dense<0.000000e+00> : vector<4x128xf32>
    %101 = tpu.matmul %100, %1, %cst_27 {dimension_numbers = #tpu.dot_dimension_numbers<[1], [0], [0], [1], [0, 0, 1, 1], [], []>} : vector<4x64xf32>, vector<64x128xf32>, vector<4x128xf32> -> vector<4x128xf32>
    %102 = arith.addf %101, %7 : vector<4x128xf32>
    %103 = vector.extract_strided_slice %102 {offsets = [0, 0], sizes = [4, 32], strides = [1, 1]} : vector<4x128xf32> to vector<4x32xf32>
    %104 = arith.negf %103 : vector<4x32xf32>
    %105 = math.exp %104 : vector<4x32xf32>
    %cst_28 = arith.constant 1.000000e+00 : f32
    %106 = vector.broadcast %cst_28 : f32 to vector<4x32xf32>
    %107 = arith.addf %106, %105 : vector<4x32xf32>
    %108 = arith.divf %106, %107 : vector<4x32xf32>
    %109 = vector.extract_strided_slice %102 {offsets = [0, 32], sizes = [4, 32], strides = [1, 1]} : vector<4x128xf32> to vector<4x32xf32>
    %110 = arith.negf %109 : vector<4x32xf32>
    %111 = math.exp %110 : vector<4x32xf32>
    %cst_29 = arith.constant 1.000000e+00 : f32
    %112 = vector.broadcast %cst_29 : f32 to vector<4x32xf32>
    %113 = arith.addf %112, %111 : vector<4x32xf32>
    %114 = arith.divf %112, %113 : vector<4x32xf32>
    %115 = vector.extract_strided_slice %102 {offsets = [0, 64], sizes = [4, 32], strides = [1, 1]} : vector<4x128xf32> to vector<4x32xf32>
    %116 = math.tanh %115 : vector<4x32xf32>
    %117 = vector.extract_strided_slice %102 {offsets = [0, 96], sizes = [4, 32], strides = [1, 1]} : vector<4x128xf32> to vector<4x32xf32>
    %118 = arith.negf %117 : vector<4x32xf32>
    %119 = math.exp %118 : vector<4x32xf32>
    %cst_30 = arith.constant 1.000000e+00 : f32
    %120 = vector.broadcast %cst_30 : f32 to vector<4x32xf32>
    %121 = arith.addf %120, %119 : vector<4x32xf32>
    %122 = arith.divf %120, %121 : vector<4x32xf32>
    %123 = arith.mulf %114, %67 : vector<4x32xf32>
    %124 = arith.mulf %108, %116 : vector<4x32xf32>
    %125 = arith.addf %123, %124 : vector<4x32xf32>
    %126 = math.tanh %125 : vector<4x32xf32>
    %127 = arith.mulf %122, %126 : vector<4x32xf32>
    %c2 = arith.constant 2 : index
    %c0_31 = arith.constant 0 : index
    %c0_32 = arith.constant 0 : index
    %128 = vector.load %arg0[%c2, %c0_31, %c0_32] : memref<8x4x16xf32, #tpu.memory_space<vmem>>, vector<1x4x16xf32>
    %129 = vector.shape_cast %128 : vector<1x4x16xf32> to vector<4x16xf32>
    %130 = tpu.concatenate %129, %99 in 1 : vector<4x16xf32>, vector<4x32xf32> -> vector<4x48xf32>
    %cst_33 = arith.constant dense<0.000000e+00> : vector<4x128xf32>
    %131 = tpu.matmul %130, %0, %cst_33 {dimension_numbers = #tpu.dot_dimension_numbers<[1], [0], [0], [1], [0, 0, 1, 1], [], []>} : vector<4x48xf32>, vector<48x128xf32>, vector<4x128xf32> -> vector<4x128xf32>
    %132 = arith.addf %131, %4 : vector<4x128xf32>
    %133 = vector.extract_strided_slice %132 {offsets = [0, 0], sizes = [4, 32], strides = [1, 1]} : vector<4x128xf32> to vector<4x32xf32>
    %134 = arith.negf %133 : vector<4x32xf32>
    %135 = math.exp %134 : vector<4x32xf32>
    %cst_34 = arith.constant 1.000000e+00 : f32
    %136 = vector.broadcast %cst_34 : f32 to vector<4x32xf32>
    %137 = arith.addf %136, %135 : vector<4x32xf32>
    %138 = arith.divf %136, %137 : vector<4x32xf32>
    %139 = vector.extract_strided_slice %132 {offsets = [0, 32], sizes = [4, 32], strides = [1, 1]} : vector<4x128xf32> to vector<4x32xf32>
    %140 = arith.negf %139 : vector<4x32xf32>
    %141 = math.exp %140 : vector<4x32xf32>
    %cst_35 = arith.constant 1.000000e+00 : f32
    %142 = vector.broadcast %cst_35 : f32 to vector<4x32xf32>
    %143 = arith.addf %142, %141 : vector<4x32xf32>
    %144 = arith.divf %142, %143 : vector<4x32xf32>
    %145 = vector.extract_strided_slice %132 {offsets = [0, 64], sizes = [4, 32], strides = [1, 1]} : vector<4x128xf32> to vector<4x32xf32>
    %146 = math.tanh %145 : vector<4x32xf32>
    %147 = vector.extract_strided_slice %132 {offsets = [0, 96], sizes = [4, 32], strides = [1, 1]} : vector<4x128xf32> to vector<4x32xf32>
    %148 = arith.negf %147 : vector<4x32xf32>
    %149 = math.exp %148 : vector<4x32xf32>
    %cst_36 = arith.constant 1.000000e+00 : f32
    %150 = vector.broadcast %cst_36 : f32 to vector<4x32xf32>
    %151 = arith.addf %150, %149 : vector<4x32xf32>
    %152 = arith.divf %150, %151 : vector<4x32xf32>
    %153 = arith.mulf %144, %97 : vector<4x32xf32>
    %154 = arith.mulf %138, %146 : vector<4x32xf32>
    %155 = arith.addf %153, %154 : vector<4x32xf32>
    %156 = math.tanh %155 : vector<4x32xf32>
    %157 = arith.mulf %152, %156 : vector<4x32xf32>
    %158 = tpu.concatenate %157, %127 in 1 : vector<4x32xf32>, vector<4x32xf32> -> vector<4x64xf32>
    %cst_37 = arith.constant dense<0.000000e+00> : vector<4x128xf32>
    %159 = tpu.matmul %158, %1, %cst_37 {dimension_numbers = #tpu.dot_dimension_numbers<[1], [0], [0], [1], [0, 0, 1, 1], [], []>} : vector<4x64xf32>, vector<64x128xf32>, vector<4x128xf32> -> vector<4x128xf32>
    %160 = arith.addf %159, %7 : vector<4x128xf32>
    %161 = vector.extract_strided_slice %160 {offsets = [0, 0], sizes = [4, 32], strides = [1, 1]} : vector<4x128xf32> to vector<4x32xf32>
    %162 = arith.negf %161 : vector<4x32xf32>
    %163 = math.exp %162 : vector<4x32xf32>
    %cst_38 = arith.constant 1.000000e+00 : f32
    %164 = vector.broadcast %cst_38 : f32 to vector<4x32xf32>
    %165 = arith.addf %164, %163 : vector<4x32xf32>
    %166 = arith.divf %164, %165 : vector<4x32xf32>
    %167 = vector.extract_strided_slice %160 {offsets = [0, 32], sizes = [4, 32], strides = [1, 1]} : vector<4x128xf32> to vector<4x32xf32>
    %168 = arith.negf %167 : vector<4x32xf32>
    %169 = math.exp %168 : vector<4x32xf32>
    %cst_39 = arith.constant 1.000000e+00 : f32
    %170 = vector.broadcast %cst_39 : f32 to vector<4x32xf32>
    %171 = arith.addf %170, %169 : vector<4x32xf32>
    %172 = arith.divf %170, %171 : vector<4x32xf32>
    %173 = vector.extract_strided_slice %160 {offsets = [0, 64], sizes = [4, 32], strides = [1, 1]} : vector<4x128xf32> to vector<4x32xf32>
    %174 = math.tanh %173 : vector<4x32xf32>
    %175 = vector.extract_strided_slice %160 {offsets = [0, 96], sizes = [4, 32], strides = [1, 1]} : vector<4x128xf32> to vector<4x32xf32>
    %176 = arith.negf %175 : vector<4x32xf32>
    %177 = math.exp %176 : vector<4x32xf32>
    %cst_40 = arith.constant 1.000000e+00 : f32
    %178 = vector.broadcast %cst_40 : f32 to vector<4x32xf32>
    %179 = arith.addf %178, %177 : vector<4x32xf32>
    %180 = arith.divf %178, %179 : vector<4x32xf32>
    %181 = arith.mulf %172, %125 : vector<4x32xf32>
    %182 = arith.mulf %166, %174 : vector<4x32xf32>
    %183 = arith.addf %181, %182 : vector<4x32xf32>
    %184 = math.tanh %183 : vector<4x32xf32>
    %185 = arith.mulf %180, %184 : vector<4x32xf32>
    %c3 = arith.constant 3 : index
    %c0_41 = arith.constant 0 : index
    %c0_42 = arith.constant 0 : index
    %186 = vector.load %arg0[%c3, %c0_41, %c0_42] : memref<8x4x16xf32, #tpu.memory_space<vmem>>, vector<1x4x16xf32>
    %187 = vector.shape_cast %186 : vector<1x4x16xf32> to vector<4x16xf32>
    %188 = tpu.concatenate %187, %157 in 1 : vector<4x16xf32>, vector<4x32xf32> -> vector<4x48xf32>
    %cst_43 = arith.constant dense<0.000000e+00> : vector<4x128xf32>
    %189 = tpu.matmul %188, %0, %cst_43 {dimension_numbers = #tpu.dot_dimension_numbers<[1], [0], [0], [1], [0, 0, 1, 1], [], []>} : vector<4x48xf32>, vector<48x128xf32>, vector<4x128xf32> -> vector<4x128xf32>
    %190 = arith.addf %189, %4 : vector<4x128xf32>
    %191 = vector.extract_strided_slice %190 {offsets = [0, 0], sizes = [4, 32], strides = [1, 1]} : vector<4x128xf32> to vector<4x32xf32>
    %192 = arith.negf %191 : vector<4x32xf32>
    %193 = math.exp %192 : vector<4x32xf32>
    %cst_44 = arith.constant 1.000000e+00 : f32
    %194 = vector.broadcast %cst_44 : f32 to vector<4x32xf32>
    %195 = arith.addf %194, %193 : vector<4x32xf32>
    %196 = arith.divf %194, %195 : vector<4x32xf32>
    %197 = vector.extract_strided_slice %190 {offsets = [0, 32], sizes = [4, 32], strides = [1, 1]} : vector<4x128xf32> to vector<4x32xf32>
    %198 = arith.negf %197 : vector<4x32xf32>
    %199 = math.exp %198 : vector<4x32xf32>
    %cst_45 = arith.constant 1.000000e+00 : f32
    %200 = vector.broadcast %cst_45 : f32 to vector<4x32xf32>
    %201 = arith.addf %200, %199 : vector<4x32xf32>
    %202 = arith.divf %200, %201 : vector<4x32xf32>
    %203 = vector.extract_strided_slice %190 {offsets = [0, 64], sizes = [4, 32], strides = [1, 1]} : vector<4x128xf32> to vector<4x32xf32>
    %204 = math.tanh %203 : vector<4x32xf32>
    %205 = vector.extract_strided_slice %190 {offsets = [0, 96], sizes = [4, 32], strides = [1, 1]} : vector<4x128xf32> to vector<4x32xf32>
    %206 = arith.negf %205 : vector<4x32xf32>
    %207 = math.exp %206 : vector<4x32xf32>
    %cst_46 = arith.constant 1.000000e+00 : f32
    %208 = vector.broadcast %cst_46 : f32 to vector<4x32xf32>
    %209 = arith.addf %208, %207 : vector<4x32xf32>
    %210 = arith.divf %208, %209 : vector<4x32xf32>
    %211 = arith.mulf %202, %155 : vector<4x32xf32>
    %212 = arith.mulf %196, %204 : vector<4x32xf32>
    %213 = arith.addf %211, %212 : vector<4x32xf32>
    %214 = math.tanh %213 : vector<4x32xf32>
    %215 = arith.mulf %210, %214 : vector<4x32xf32>
    %216 = tpu.concatenate %215, %185 in 1 : vector<4x32xf32>, vector<4x32xf32> -> vector<4x64xf32>
    %cst_47 = arith.constant dense<0.000000e+00> : vector<4x128xf32>
    %217 = tpu.matmul %216, %1, %cst_47 {dimension_numbers = #tpu.dot_dimension_numbers<[1], [0], [0], [1], [0, 0, 1, 1], [], []>} : vector<4x64xf32>, vector<64x128xf32>, vector<4x128xf32> -> vector<4x128xf32>
    %218 = arith.addf %217, %7 : vector<4x128xf32>
    %219 = vector.extract_strided_slice %218 {offsets = [0, 0], sizes = [4, 32], strides = [1, 1]} : vector<4x128xf32> to vector<4x32xf32>
    %220 = arith.negf %219 : vector<4x32xf32>
    %221 = math.exp %220 : vector<4x32xf32>
    %cst_48 = arith.constant 1.000000e+00 : f32
    %222 = vector.broadcast %cst_48 : f32 to vector<4x32xf32>
    %223 = arith.addf %222, %221 : vector<4x32xf32>
    %224 = arith.divf %222, %223 : vector<4x32xf32>
    %225 = vector.extract_strided_slice %218 {offsets = [0, 32], sizes = [4, 32], strides = [1, 1]} : vector<4x128xf32> to vector<4x32xf32>
    %226 = arith.negf %225 : vector<4x32xf32>
    %227 = math.exp %226 : vector<4x32xf32>
    %cst_49 = arith.constant 1.000000e+00 : f32
    %228 = vector.broadcast %cst_49 : f32 to vector<4x32xf32>
    %229 = arith.addf %228, %227 : vector<4x32xf32>
    %230 = arith.divf %228, %229 : vector<4x32xf32>
    %231 = vector.extract_strided_slice %218 {offsets = [0, 64], sizes = [4, 32], strides = [1, 1]} : vector<4x128xf32> to vector<4x32xf32>
    %232 = math.tanh %231 : vector<4x32xf32>
    %233 = vector.extract_strided_slice %218 {offsets = [0, 96], sizes = [4, 32], strides = [1, 1]} : vector<4x128xf32> to vector<4x32xf32>
    %234 = arith.negf %233 : vector<4x32xf32>
    %235 = math.exp %234 : vector<4x32xf32>
    %cst_50 = arith.constant 1.000000e+00 : f32
    %236 = vector.broadcast %cst_50 : f32 to vector<4x32xf32>
    %237 = arith.addf %236, %235 : vector<4x32xf32>
    %238 = arith.divf %236, %237 : vector<4x32xf32>
    %239 = arith.mulf %230, %183 : vector<4x32xf32>
    %240 = arith.mulf %224, %232 : vector<4x32xf32>
    %241 = arith.addf %239, %240 : vector<4x32xf32>
    %242 = math.tanh %241 : vector<4x32xf32>
    %243 = arith.mulf %238, %242 : vector<4x32xf32>
    %c4 = arith.constant 4 : index
    %c0_51 = arith.constant 0 : index
    %c0_52 = arith.constant 0 : index
    %244 = vector.load %arg0[%c4, %c0_51, %c0_52] : memref<8x4x16xf32, #tpu.memory_space<vmem>>, vector<1x4x16xf32>
    %245 = vector.shape_cast %244 : vector<1x4x16xf32> to vector<4x16xf32>
    %246 = tpu.concatenate %245, %215 in 1 : vector<4x16xf32>, vector<4x32xf32> -> vector<4x48xf32>
    %cst_53 = arith.constant dense<0.000000e+00> : vector<4x128xf32>
    %247 = tpu.matmul %246, %0, %cst_53 {dimension_numbers = #tpu.dot_dimension_numbers<[1], [0], [0], [1], [0, 0, 1, 1], [], []>} : vector<4x48xf32>, vector<48x128xf32>, vector<4x128xf32> -> vector<4x128xf32>
    %248 = arith.addf %247, %4 : vector<4x128xf32>
    %249 = vector.extract_strided_slice %248 {offsets = [0, 0], sizes = [4, 32], strides = [1, 1]} : vector<4x128xf32> to vector<4x32xf32>
    %250 = arith.negf %249 : vector<4x32xf32>
    %251 = math.exp %250 : vector<4x32xf32>
    %cst_54 = arith.constant 1.000000e+00 : f32
    %252 = vector.broadcast %cst_54 : f32 to vector<4x32xf32>
    %253 = arith.addf %252, %251 : vector<4x32xf32>
    %254 = arith.divf %252, %253 : vector<4x32xf32>
    %255 = vector.extract_strided_slice %248 {offsets = [0, 32], sizes = [4, 32], strides = [1, 1]} : vector<4x128xf32> to vector<4x32xf32>
    %256 = arith.negf %255 : vector<4x32xf32>
    %257 = math.exp %256 : vector<4x32xf32>
    %cst_55 = arith.constant 1.000000e+00 : f32
    %258 = vector.broadcast %cst_55 : f32 to vector<4x32xf32>
    %259 = arith.addf %258, %257 : vector<4x32xf32>
    %260 = arith.divf %258, %259 : vector<4x32xf32>
    %261 = vector.extract_strided_slice %248 {offsets = [0, 64], sizes = [4, 32], strides = [1, 1]} : vector<4x128xf32> to vector<4x32xf32>
    %262 = math.tanh %261 : vector<4x32xf32>
    %263 = vector.extract_strided_slice %248 {offsets = [0, 96], sizes = [4, 32], strides = [1, 1]} : vector<4x128xf32> to vector<4x32xf32>
    %264 = arith.negf %263 : vector<4x32xf32>
    %265 = math.exp %264 : vector<4x32xf32>
    %cst_56 = arith.constant 1.000000e+00 : f32
    %266 = vector.broadcast %cst_56 : f32 to vector<4x32xf32>
    %267 = arith.addf %266, %265 : vector<4x32xf32>
    %268 = arith.divf %266, %267 : vector<4x32xf32>
    %269 = arith.mulf %260, %213 : vector<4x32xf32>
    %270 = arith.mulf %254, %262 : vector<4x32xf32>
    %271 = arith.addf %269, %270 : vector<4x32xf32>
    %272 = math.tanh %271 : vector<4x32xf32>
    %273 = arith.mulf %268, %272 : vector<4x32xf32>
    %274 = tpu.concatenate %273, %243 in 1 : vector<4x32xf32>, vector<4x32xf32> -> vector<4x64xf32>
    %cst_57 = arith.constant dense<0.000000e+00> : vector<4x128xf32>
    %275 = tpu.matmul %274, %1, %cst_57 {dimension_numbers = #tpu.dot_dimension_numbers<[1], [0], [0], [1], [0, 0, 1, 1], [], []>} : vector<4x64xf32>, vector<64x128xf32>, vector<4x128xf32> -> vector<4x128xf32>
    %276 = arith.addf %275, %7 : vector<4x128xf32>
    %277 = vector.extract_strided_slice %276 {offsets = [0, 0], sizes = [4, 32], strides = [1, 1]} : vector<4x128xf32> to vector<4x32xf32>
    %278 = arith.negf %277 : vector<4x32xf32>
    %279 = math.exp %278 : vector<4x32xf32>
    %cst_58 = arith.constant 1.000000e+00 : f32
    %280 = vector.broadcast %cst_58 : f32 to vector<4x32xf32>
    %281 = arith.addf %280, %279 : vector<4x32xf32>
    %282 = arith.divf %280, %281 : vector<4x32xf32>
    %283 = vector.extract_strided_slice %276 {offsets = [0, 32], sizes = [4, 32], strides = [1, 1]} : vector<4x128xf32> to vector<4x32xf32>
    %284 = arith.negf %283 : vector<4x32xf32>
    %285 = math.exp %284 : vector<4x32xf32>
    %cst_59 = arith.constant 1.000000e+00 : f32
    %286 = vector.broadcast %cst_59 : f32 to vector<4x32xf32>
    %287 = arith.addf %286, %285 : vector<4x32xf32>
    %288 = arith.divf %286, %287 : vector<4x32xf32>
    %289 = vector.extract_strided_slice %276 {offsets = [0, 64], sizes = [4, 32], strides = [1, 1]} : vector<4x128xf32> to vector<4x32xf32>
    %290 = math.tanh %289 : vector<4x32xf32>
    %291 = vector.extract_strided_slice %276 {offsets = [0, 96], sizes = [4, 32], strides = [1, 1]} : vector<4x128xf32> to vector<4x32xf32>
    %292 = arith.negf %291 : vector<4x32xf32>
    %293 = math.exp %292 : vector<4x32xf32>
    %cst_60 = arith.constant 1.000000e+00 : f32
    %294 = vector.broadcast %cst_60 : f32 to vector<4x32xf32>
    %295 = arith.addf %294, %293 : vector<4x32xf32>
    %296 = arith.divf %294, %295 : vector<4x32xf32>
    %297 = arith.mulf %288, %241 : vector<4x32xf32>
    %298 = arith.mulf %282, %290 : vector<4x32xf32>
    %299 = arith.addf %297, %298 : vector<4x32xf32>
    %300 = math.tanh %299 : vector<4x32xf32>
    %301 = arith.mulf %296, %300 : vector<4x32xf32>
    %c5 = arith.constant 5 : index
    %c0_61 = arith.constant 0 : index
    %c0_62 = arith.constant 0 : index
    %302 = vector.load %arg0[%c5, %c0_61, %c0_62] : memref<8x4x16xf32, #tpu.memory_space<vmem>>, vector<1x4x16xf32>
    %303 = vector.shape_cast %302 : vector<1x4x16xf32> to vector<4x16xf32>
    %304 = tpu.concatenate %303, %273 in 1 : vector<4x16xf32>, vector<4x32xf32> -> vector<4x48xf32>
    %cst_63 = arith.constant dense<0.000000e+00> : vector<4x128xf32>
    %305 = tpu.matmul %304, %0, %cst_63 {dimension_numbers = #tpu.dot_dimension_numbers<[1], [0], [0], [1], [0, 0, 1, 1], [], []>} : vector<4x48xf32>, vector<48x128xf32>, vector<4x128xf32> -> vector<4x128xf32>
    %306 = arith.addf %305, %4 : vector<4x128xf32>
    %307 = vector.extract_strided_slice %306 {offsets = [0, 0], sizes = [4, 32], strides = [1, 1]} : vector<4x128xf32> to vector<4x32xf32>
    %308 = arith.negf %307 : vector<4x32xf32>
    %309 = math.exp %308 : vector<4x32xf32>
    %cst_64 = arith.constant 1.000000e+00 : f32
    %310 = vector.broadcast %cst_64 : f32 to vector<4x32xf32>
    %311 = arith.addf %310, %309 : vector<4x32xf32>
    %312 = arith.divf %310, %311 : vector<4x32xf32>
    %313 = vector.extract_strided_slice %306 {offsets = [0, 32], sizes = [4, 32], strides = [1, 1]} : vector<4x128xf32> to vector<4x32xf32>
    %314 = arith.negf %313 : vector<4x32xf32>
    %315 = math.exp %314 : vector<4x32xf32>
    %cst_65 = arith.constant 1.000000e+00 : f32
    %316 = vector.broadcast %cst_65 : f32 to vector<4x32xf32>
    %317 = arith.addf %316, %315 : vector<4x32xf32>
    %318 = arith.divf %316, %317 : vector<4x32xf32>
    %319 = vector.extract_strided_slice %306 {offsets = [0, 64], sizes = [4, 32], strides = [1, 1]} : vector<4x128xf32> to vector<4x32xf32>
    %320 = math.tanh %319 : vector<4x32xf32>
    %321 = vector.extract_strided_slice %306 {offsets = [0, 96], sizes = [4, 32], strides = [1, 1]} : vector<4x128xf32> to vector<4x32xf32>
    %322 = arith.negf %321 : vector<4x32xf32>
    %323 = math.exp %322 : vector<4x32xf32>
    %cst_66 = arith.constant 1.000000e+00 : f32
    %324 = vector.broadcast %cst_66 : f32 to vector<4x32xf32>
    %325 = arith.addf %324, %323 : vector<4x32xf32>
    %326 = arith.divf %324, %325 : vector<4x32xf32>
    %327 = arith.mulf %318, %271 : vector<4x32xf32>
    %328 = arith.mulf %312, %320 : vector<4x32xf32>
    %329 = arith.addf %327, %328 : vector<4x32xf32>
    %330 = math.tanh %329 : vector<4x32xf32>
    %331 = arith.mulf %326, %330 : vector<4x32xf32>
    %332 = tpu.concatenate %331, %301 in 1 : vector<4x32xf32>, vector<4x32xf32> -> vector<4x64xf32>
    %cst_67 = arith.constant dense<0.000000e+00> : vector<4x128xf32>
    %333 = tpu.matmul %332, %1, %cst_67 {dimension_numbers = #tpu.dot_dimension_numbers<[1], [0], [0], [1], [0, 0, 1, 1], [], []>} : vector<4x64xf32>, vector<64x128xf32>, vector<4x128xf32> -> vector<4x128xf32>
    %334 = arith.addf %333, %7 : vector<4x128xf32>
    %335 = vector.extract_strided_slice %334 {offsets = [0, 0], sizes = [4, 32], strides = [1, 1]} : vector<4x128xf32> to vector<4x32xf32>
    %336 = arith.negf %335 : vector<4x32xf32>
    %337 = math.exp %336 : vector<4x32xf32>
    %cst_68 = arith.constant 1.000000e+00 : f32
    %338 = vector.broadcast %cst_68 : f32 to vector<4x32xf32>
    %339 = arith.addf %338, %337 : vector<4x32xf32>
    %340 = arith.divf %338, %339 : vector<4x32xf32>
    %341 = vector.extract_strided_slice %334 {offsets = [0, 32], sizes = [4, 32], strides = [1, 1]} : vector<4x128xf32> to vector<4x32xf32>
    %342 = arith.negf %341 : vector<4x32xf32>
    %343 = math.exp %342 : vector<4x32xf32>
    %cst_69 = arith.constant 1.000000e+00 : f32
    %344 = vector.broadcast %cst_69 : f32 to vector<4x32xf32>
    %345 = arith.addf %344, %343 : vector<4x32xf32>
    %346 = arith.divf %344, %345 : vector<4x32xf32>
    %347 = vector.extract_strided_slice %334 {offsets = [0, 64], sizes = [4, 32], strides = [1, 1]} : vector<4x128xf32> to vector<4x32xf32>
    %348 = math.tanh %347 : vector<4x32xf32>
    %349 = vector.extract_strided_slice %334 {offsets = [0, 96], sizes = [4, 32], strides = [1, 1]} : vector<4x128xf32> to vector<4x32xf32>
    %350 = arith.negf %349 : vector<4x32xf32>
    %351 = math.exp %350 : vector<4x32xf32>
    %cst_70 = arith.constant 1.000000e+00 : f32
    %352 = vector.broadcast %cst_70 : f32 to vector<4x32xf32>
    %353 = arith.addf %352, %351 : vector<4x32xf32>
    %354 = arith.divf %352, %353 : vector<4x32xf32>
    %355 = arith.mulf %346, %299 : vector<4x32xf32>
    %356 = arith.mulf %340, %348 : vector<4x32xf32>
    %357 = arith.addf %355, %356 : vector<4x32xf32>
    %358 = math.tanh %357 : vector<4x32xf32>
    %359 = arith.mulf %354, %358 : vector<4x32xf32>
    %c6 = arith.constant 6 : index
    %c0_71 = arith.constant 0 : index
    %c0_72 = arith.constant 0 : index
    %360 = vector.load %arg0[%c6, %c0_71, %c0_72] : memref<8x4x16xf32, #tpu.memory_space<vmem>>, vector<1x4x16xf32>
    %361 = vector.shape_cast %360 : vector<1x4x16xf32> to vector<4x16xf32>
    %362 = tpu.concatenate %361, %331 in 1 : vector<4x16xf32>, vector<4x32xf32> -> vector<4x48xf32>
    %cst_73 = arith.constant dense<0.000000e+00> : vector<4x128xf32>
    %363 = tpu.matmul %362, %0, %cst_73 {dimension_numbers = #tpu.dot_dimension_numbers<[1], [0], [0], [1], [0, 0, 1, 1], [], []>} : vector<4x48xf32>, vector<48x128xf32>, vector<4x128xf32> -> vector<4x128xf32>
    %364 = arith.addf %363, %4 : vector<4x128xf32>
    %365 = vector.extract_strided_slice %364 {offsets = [0, 0], sizes = [4, 32], strides = [1, 1]} : vector<4x128xf32> to vector<4x32xf32>
    %366 = arith.negf %365 : vector<4x32xf32>
    %367 = math.exp %366 : vector<4x32xf32>
    %cst_74 = arith.constant 1.000000e+00 : f32
    %368 = vector.broadcast %cst_74 : f32 to vector<4x32xf32>
    %369 = arith.addf %368, %367 : vector<4x32xf32>
    %370 = arith.divf %368, %369 : vector<4x32xf32>
    %371 = vector.extract_strided_slice %364 {offsets = [0, 32], sizes = [4, 32], strides = [1, 1]} : vector<4x128xf32> to vector<4x32xf32>
    %372 = arith.negf %371 : vector<4x32xf32>
    %373 = math.exp %372 : vector<4x32xf32>
    %cst_75 = arith.constant 1.000000e+00 : f32
    %374 = vector.broadcast %cst_75 : f32 to vector<4x32xf32>
    %375 = arith.addf %374, %373 : vector<4x32xf32>
    %376 = arith.divf %374, %375 : vector<4x32xf32>
    %377 = vector.extract_strided_slice %364 {offsets = [0, 64], sizes = [4, 32], strides = [1, 1]} : vector<4x128xf32> to vector<4x32xf32>
    %378 = math.tanh %377 : vector<4x32xf32>
    %379 = vector.extract_strided_slice %364 {offsets = [0, 96], sizes = [4, 32], strides = [1, 1]} : vector<4x128xf32> to vector<4x32xf32>
    %380 = arith.negf %379 : vector<4x32xf32>
    %381 = math.exp %380 : vector<4x32xf32>
    %cst_76 = arith.constant 1.000000e+00 : f32
    %382 = vector.broadcast %cst_76 : f32 to vector<4x32xf32>
    %383 = arith.addf %382, %381 : vector<4x32xf32>
    %384 = arith.divf %382, %383 : vector<4x32xf32>
    %385 = arith.mulf %376, %329 : vector<4x32xf32>
    %386 = arith.mulf %370, %378 : vector<4x32xf32>
    %387 = arith.addf %385, %386 : vector<4x32xf32>
    %388 = math.tanh %387 : vector<4x32xf32>
    %389 = arith.mulf %384, %388 : vector<4x32xf32>
    %390 = tpu.concatenate %389, %359 in 1 : vector<4x32xf32>, vector<4x32xf32> -> vector<4x64xf32>
    %cst_77 = arith.constant dense<0.000000e+00> : vector<4x128xf32>
    %391 = tpu.matmul %390, %1, %cst_77 {dimension_numbers = #tpu.dot_dimension_numbers<[1], [0], [0], [1], [0, 0, 1, 1], [], []>} : vector<4x64xf32>, vector<64x128xf32>, vector<4x128xf32> -> vector<4x128xf32>
    %392 = arith.addf %391, %7 : vector<4x128xf32>
    %393 = vector.extract_strided_slice %392 {offsets = [0, 0], sizes = [4, 32], strides = [1, 1]} : vector<4x128xf32> to vector<4x32xf32>
    %394 = arith.negf %393 : vector<4x32xf32>
    %395 = math.exp %394 : vector<4x32xf32>
    %cst_78 = arith.constant 1.000000e+00 : f32
    %396 = vector.broadcast %cst_78 : f32 to vector<4x32xf32>
    %397 = arith.addf %396, %395 : vector<4x32xf32>
    %398 = arith.divf %396, %397 : vector<4x32xf32>
    %399 = vector.extract_strided_slice %392 {offsets = [0, 32], sizes = [4, 32], strides = [1, 1]} : vector<4x128xf32> to vector<4x32xf32>
    %400 = arith.negf %399 : vector<4x32xf32>
    %401 = math.exp %400 : vector<4x32xf32>
    %cst_79 = arith.constant 1.000000e+00 : f32
    %402 = vector.broadcast %cst_79 : f32 to vector<4x32xf32>
    %403 = arith.addf %402, %401 : vector<4x32xf32>
    %404 = arith.divf %402, %403 : vector<4x32xf32>
    %405 = vector.extract_strided_slice %392 {offsets = [0, 64], sizes = [4, 32], strides = [1, 1]} : vector<4x128xf32> to vector<4x32xf32>
    %406 = math.tanh %405 : vector<4x32xf32>
    %407 = vector.extract_strided_slice %392 {offsets = [0, 96], sizes = [4, 32], strides = [1, 1]} : vector<4x128xf32> to vector<4x32xf32>
    %408 = arith.negf %407 : vector<4x32xf32>
    %409 = math.exp %408 : vector<4x32xf32>
    %cst_80 = arith.constant 1.000000e+00 : f32
    %410 = vector.broadcast %cst_80 : f32 to vector<4x32xf32>
    %411 = arith.addf %410, %409 : vector<4x32xf32>
    %412 = arith.divf %410, %411 : vector<4x32xf32>
    %413 = arith.mulf %404, %357 : vector<4x32xf32>
    %414 = arith.mulf %398, %406 : vector<4x32xf32>
    %415 = arith.addf %413, %414 : vector<4x32xf32>
    %416 = math.tanh %415 : vector<4x32xf32>
    %417 = arith.mulf %412, %416 : vector<4x32xf32>
    %c7 = arith.constant 7 : index
    %c0_81 = arith.constant 0 : index
    %c0_82 = arith.constant 0 : index
    %418 = vector.load %arg0[%c7, %c0_81, %c0_82] : memref<8x4x16xf32, #tpu.memory_space<vmem>>, vector<1x4x16xf32>
    %419 = vector.shape_cast %418 : vector<1x4x16xf32> to vector<4x16xf32>
    %420 = tpu.concatenate %419, %389 in 1 : vector<4x16xf32>, vector<4x32xf32> -> vector<4x48xf32>
    %cst_83 = arith.constant dense<0.000000e+00> : vector<4x128xf32>
    %421 = tpu.matmul %420, %0, %cst_83 {dimension_numbers = #tpu.dot_dimension_numbers<[1], [0], [0], [1], [0, 0, 1, 1], [], []>} : vector<4x48xf32>, vector<48x128xf32>, vector<4x128xf32> -> vector<4x128xf32>
    %422 = arith.addf %421, %4 : vector<4x128xf32>
    %423 = vector.extract_strided_slice %422 {offsets = [0, 0], sizes = [4, 32], strides = [1, 1]} : vector<4x128xf32> to vector<4x32xf32>
    %424 = arith.negf %423 : vector<4x32xf32>
    %425 = math.exp %424 : vector<4x32xf32>
    %cst_84 = arith.constant 1.000000e+00 : f32
    %426 = vector.broadcast %cst_84 : f32 to vector<4x32xf32>
    %427 = arith.addf %426, %425 : vector<4x32xf32>
    %428 = arith.divf %426, %427 : vector<4x32xf32>
    %429 = vector.extract_strided_slice %422 {offsets = [0, 32], sizes = [4, 32], strides = [1, 1]} : vector<4x128xf32> to vector<4x32xf32>
    %430 = arith.negf %429 : vector<4x32xf32>
    %431 = math.exp %430 : vector<4x32xf32>
    %cst_85 = arith.constant 1.000000e+00 : f32
    %432 = vector.broadcast %cst_85 : f32 to vector<4x32xf32>
    %433 = arith.addf %432, %431 : vector<4x32xf32>
    %434 = arith.divf %432, %433 : vector<4x32xf32>
    %435 = vector.extract_strided_slice %422 {offsets = [0, 64], sizes = [4, 32], strides = [1, 1]} : vector<4x128xf32> to vector<4x32xf32>
    %436 = math.tanh %435 : vector<4x32xf32>
    %437 = vector.extract_strided_slice %422 {offsets = [0, 96], sizes = [4, 32], strides = [1, 1]} : vector<4x128xf32> to vector<4x32xf32>
    %438 = arith.negf %437 : vector<4x32xf32>
    %439 = math.exp %438 : vector<4x32xf32>
    %cst_86 = arith.constant 1.000000e+00 : f32
    %440 = vector.broadcast %cst_86 : f32 to vector<4x32xf32>
    %441 = arith.addf %440, %439 : vector<4x32xf32>
    %442 = arith.divf %440, %441 : vector<4x32xf32>
    %443 = arith.mulf %434, %387 : vector<4x32xf32>
    %444 = arith.mulf %428, %436 : vector<4x32xf32>
    %445 = arith.addf %443, %444 : vector<4x32xf32>
    %446 = math.tanh %445 : vector<4x32xf32>
    %447 = arith.mulf %442, %446 : vector<4x32xf32>
    %448 = tpu.concatenate %447, %417 in 1 : vector<4x32xf32>, vector<4x32xf32> -> vector<4x64xf32>
    %cst_87 = arith.constant dense<0.000000e+00> : vector<4x128xf32>
    %449 = tpu.matmul %448, %1, %cst_87 {dimension_numbers = #tpu.dot_dimension_numbers<[1], [0], [0], [1], [0, 0, 1, 1], [], []>} : vector<4x64xf32>, vector<64x128xf32>, vector<4x128xf32> -> vector<4x128xf32>
    %450 = arith.addf %449, %7 : vector<4x128xf32>
    %451 = vector.extract_strided_slice %450 {offsets = [0, 0], sizes = [4, 32], strides = [1, 1]} : vector<4x128xf32> to vector<4x32xf32>
    %452 = arith.negf %451 : vector<4x32xf32>
    %453 = math.exp %452 : vector<4x32xf32>
    %cst_88 = arith.constant 1.000000e+00 : f32
    %454 = vector.broadcast %cst_88 : f32 to vector<4x32xf32>
    %455 = arith.addf %454, %453 : vector<4x32xf32>
    %456 = arith.divf %454, %455 : vector<4x32xf32>
    %457 = vector.extract_strided_slice %450 {offsets = [0, 32], sizes = [4, 32], strides = [1, 1]} : vector<4x128xf32> to vector<4x32xf32>
    %458 = arith.negf %457 : vector<4x32xf32>
    %459 = math.exp %458 : vector<4x32xf32>
    %cst_89 = arith.constant 1.000000e+00 : f32
    %460 = vector.broadcast %cst_89 : f32 to vector<4x32xf32>
    %461 = arith.addf %460, %459 : vector<4x32xf32>
    %462 = arith.divf %460, %461 : vector<4x32xf32>
    %463 = vector.extract_strided_slice %450 {offsets = [0, 64], sizes = [4, 32], strides = [1, 1]} : vector<4x128xf32> to vector<4x32xf32>
    %464 = math.tanh %463 : vector<4x32xf32>
    %465 = vector.extract_strided_slice %450 {offsets = [0, 96], sizes = [4, 32], strides = [1, 1]} : vector<4x128xf32> to vector<4x32xf32>
    %466 = arith.negf %465 : vector<4x32xf32>
    %467 = math.exp %466 : vector<4x32xf32>
    %cst_90 = arith.constant 1.000000e+00 : f32
    %468 = vector.broadcast %cst_90 : f32 to vector<4x32xf32>
    %469 = arith.addf %468, %467 : vector<4x32xf32>
    %470 = arith.divf %468, %469 : vector<4x32xf32>
    %471 = arith.mulf %462, %415 : vector<4x32xf32>
    %472 = arith.mulf %456, %464 : vector<4x32xf32>
    %473 = arith.addf %471, %472 : vector<4x32xf32>
    %474 = math.tanh %473 : vector<4x32xf32>
    %475 = arith.mulf %470, %474 : vector<4x32xf32>
    %c0_91 = arith.constant 0 : index
    %c0_92 = arith.constant 0 : index
    %476 = vector.load %arg5[%c0_91, %c0_92] : memref<32x8xf32, #tpu.memory_space<vmem>>, vector<32x8xf32>
    %cst_93 = arith.constant dense<0.000000e+00> : vector<4x8xf32>
    %477 = tpu.matmul %475, %476, %cst_93 {dimension_numbers = #tpu.dot_dimension_numbers<[1], [0], [0], [1], [0, 0, 1, 1], [], []>} : vector<4x32xf32>, vector<32x8xf32>, vector<4x8xf32> -> vector<4x8xf32>
    %c0_94 = arith.constant 0 : index
    %c0_95 = arith.constant 0 : index
    %478 = vector.load %arg6[%c0_94, %c0_95] : memref<1x8xf32, #tpu.memory_space<vmem>>, vector<1x8xf32>
    %479 = vector.broadcast %478 : vector<1x8xf32> to vector<4x8xf32>
    %480 = arith.addf %477, %479 : vector<4x8xf32>
    %c0_96 = arith.constant 0 : index
    %c0_97 = arith.constant 0 : index
    %481 = vector.load %arg7[%c0_96, %c0_97] : memref<4x8xf32, #tpu.memory_space<vmem>>, vector<4x8xf32>
    tpu.vector_store %arg7[%c0_96, %c0_97], %480 {strides = array<i32>} : memref<4x8xf32, #tpu.memory_space<vmem>>, vector<4x8xf32>,
    return
  }
}

</mosaic_0001>

<bundles_post_ra>
// kernel: tpu_custom_call.1
= control target key start
LH: loop header
LB: loop body
LE: loop exit
PB: predicated region body
PF: predicated region fallthrough
CT: control target
= control target key end

     0   :  { %12 = vsyncpa [#allocation3], 0  ;;  %s3169_s0 = inlined_call_operand.vmem [shape: f32[8,4,16], index: 0, kind: input, shape index: {}]   ;;  %s3170_s1 = inlined_call_operand.hbm [shape: f32[48,128], index: 1, kind: input, shape index: {}]   ;;  %s3171_s2 = inlined_call_operand.vmem [shape: f32[1,128], index: 2, kind: input, shape index: {}]   ;;  %s3172_s3 = inlined_call_operand.hbm [shape: f32[64,128], index: 3, kind: input, shape index: {}]   ;;  %s3173_s4 = inlined_call_operand.vmem [shape: f32[1,128], index: 4, kind: input, shape index: {}]   ;;  %s3174_s5 = inlined_call_operand.vmem [shape: f32[32,8], index: 5, kind: input, shape index: {}]   ;;  %s3175_s6 = inlined_call_operand.vmem [shape: f32[1,8], index: 6, kind: input, shape index: {}]   ;;  %s3176_s7 = inlined_call_operand.hbm [shape: f32[4,8], index: 7, kind: output, shape index: {}]  }
   0x1   :  { %13 = vsyncpa [#allocation6], 0 }
   0x2   :  { %14 = vsyncpa [#allocation4], 0  ;;  %s2699_s24 = smov [#allocation2]   ;;  %s2627_s28 = scalar_lea.hbm %s3170_s1, 768 }
   0x3   :  { %s22_s25 = sshll.u32 %s2699_s24, 4  ;;  %p2628_p0 = scmp.ne.s32.totalorder %s3170_s1, %s2627_s28  ;;  %s23_s25 = int_to_ptr.vmem [resolvable:$true] %s22_s25 }
   0x4   :  { %p2631_p1 = scmp.lt.u32.totalorder %s2627_s28, %s3170_s1 }
   0x6   :  { %p2633_p2 = pnand %p2631_p1, %p2628_p0 }
   0x8   :  { %2636 = shalt.err (!%p2633_p2)
}
   0x9   :  { %s2637_s10 = scalar_lea.vmem %s23_s25, 768  ;;  %p2642_p4 = scmp.lt.s32.totalorder %s23_s25, %s23_s25 }
   0xa   :  { %p2638_p3 = scmp.ne.s32.totalorder %s23_s25, %s2637_s10  ;;  %p2643_p5 = scmp.lt.s32.totalorder %s2637_s10, %s2637_s10 }
   0xc   :  { %p2644_p6 = por %p2643_p5, %p2642_p4 }
   0xe   :  { %p2645_p7 = pnand %p2644_p6, %p2638_p3 }
  0x10   :  { %2648 = shalt.err (!%p2645_p7)
}
  0x11   :  { %s2700_s11 = smov 128   ;;  %s2701_s12 = smov 8  }
  0x12   :  { %28 = dma.hbm_to_vmem [thread:$0]  %s3170_s1, 768, %s23_s25, [#allocation3], %s2700_s11, %s2700_s11, %s2701_s12  }
  0x13   :  { %s2702_s15 = smov [#allocation5]   ;;  %s2649_s19 = scalar_lea.hbm %s3172_s3, 1024 }
  0x14   :  { %s36_s16 = sshll.u32 %s2702_s15, 4  ;;  %p2650_p8 = scmp.ne.s32.totalorder %s3172_s3, %s2649_s19  ;;  %s37_s16 = int_to_ptr.vmem [resolvable:$true] %s36_s16 }
  0x15   :  { %p2653_p9 = scmp.lt.u32.totalorder %s2649_s19, %s3172_s3 }
  0x17   :  { %p2655_p10 = pnand %p2653_p9, %p2650_p8 }
  0x19   :  { %2658 = shalt.err (!%p2655_p10)
}
  0x1a   :  { %s2659_s24 = scalar_lea.vmem %s37_s16, 1024  ;;  %p2664_p12 = scmp.lt.s32.totalorder %s37_s16, %s37_s16 }
  0x1b   :  { %p2660_p11 = scmp.ne.s32.totalorder %s37_s16, %s2659_s24  ;;  %p2665_p13 = scmp.lt.s32.totalorder %s2659_s24, %s2659_s24 }
  0x1d   :  { %p2666_p0 = por %p2665_p13, %p2664_p12 }
  0x1f   :  { %p2667_p1 = pnand %p2666_p0, %p2660_p11 }
  0x21   :  { %2670 = shalt.err (!%p2667_p1)
}
  0x22   :  { %42 = dma.hbm_to_vmem [thread:$0]  %s3172_s3, 1024, %s37_s16, [#allocation6], %s2700_s11, %s2700_s11, %s2701_s12  }
  0x23   :  { %2693 = dma.done.wait [#allocation3], 768  }
  0x24   :  { %2694 = vsyncadd [#allocation3], 4294966528 }
  0x25   :  { %2695 = dma.done.wait [#allocation6], 1024  }
  0x26   :  { %2696 = vsyncadd [#allocation6], 4294966272  ;;  %v2703_v0 = vmov 0.0|0.0   ;;  %vm2704_vm0 = vmmov 0   ;;  %v2705_v1 = vmov 0.0   ;;  %v55_v2 = vld [vmem:[#allocation2] sm:$0xff] }
  0x27   :  { %2314 = vmatprep.subr.bf16.mxu0 %v2703_v0  ;;  %2043 = vmatprep.mubr.msk.f32.mxu0 %vm2704_vm0, %v2705_v1  ;;  %v56_v3 = vld [vmem:[#allocation2 + $0x8] sm:$0xff]  ;;  %v57_v4 = vld [vmem:[#allocation2 + $0x10] sm:$0xff]  ;;  %v58_v6 = vld [vmem:[#allocation2 + $0x18] sm:$0xff]  ;;  %vm84_vm1 = vcmask 130048   ;;  %vm86_vm2 = vcmask 392192   ;;  %s2706_s29 = smov 64  }
  0x28   :  { %2323 = vmatprep.subr.bf16.mxu1 %v2703_v0  ;;  %2062 = vmatprep.mubr.msk.f32.mxu1 %vm2704_vm0, %v2705_v1  ;;  %v2780_v5 = vpack.c.bf16 %v56_v3, %v55_v2  ;;  %v2783_v7 = vpack.c.bf16 %v58_v6, %v57_v4  ;;  %v59_v8 = vld [vmem:[#allocation2 + $0x20] sm:$0xff]  ;;  %v60_v9 = vld [vmem:[#allocation2 + $0x28] sm:$0xff]  ;;  %s2707_s30 = smov 32   ;;  %v61_v27 = vld [vmem:[#allocation5] sm:$0xff]  ;;  %vm188_vm3 = vcmask 261120   ;;  %vm190_vm4 = vcmask 523264  }
  0x29   :  { %v2787_v10 = vpack.c.bf16 %v60_v9, %v59_v8  ;;  %v83_v11 = vld [vmem:[%s3169_s0] sm:$0xf]  ;;  %v62_v28 = vld [vmem:[#allocation5 + $0x8] sm:$0xff]  ;;  %v64_v31 = vld [vmem:[#allocation5 + $0x18] sm:$0xff]  ;;  %vm1837_vm5 = vcmask 60416  }
  0x2a   :  { %2316 = vmatpush3.bf16.msra.mxu0 %v2780_v5  ;;  %v85_v12 = vsel %vm84_vm1, %v83_v11, 0.0  ;;  %v2808_v13 = vld [vmem:[%s3171_s2] ss:$0 sm:$0xff]  ;;  %v2816_v30 = vpack.c.bf16 %v62_v28, %v61_v27  ;;  %v65_v33 = vld [vmem:[#allocation5 + $0x20] sm:$0xff]  ;;  %v66_v34 = vld [vmem:[#allocation5 + $0x28] sm:$0xff]  ;;  %s2708_s2 = smov 48  }
  0x2b   :  { %2317 = vmatprep.subr.bf16.mxu0 %v2703_v0  ;;  %v63_v29 = vld [vmem:[#allocation5 + $0x10] sm:$0xff]  ;;  %v2823_v35 = vpack.c.bf16 %v66_v34, %v65_v33  ;;  %v68_v37 = vld [vmem:[#allocation5 + $0x38] sm:$0xff] }
  0x2c   :  { %2325 = vmatpush3.bf16.msra.mxu1 %v2816_v30  ;;  %v2819_v32 = vpack.c.bf16 %v64_v31, %v63_v29  ;;  %v67_v36 = vld [vmem:[#allocation5 + $0x30] sm:$0xff] }
  0x2d   :  { %2326 = vmatprep.subr.bf16.mxu1 %v2703_v0  ;;  %v2828_v39 = vpack.c.bf16 %v68_v37, %v67_v36  ;;  %v1861_v42 = vld [vmem:[%s3169_s0 + $0x4] sm:$0xf]  ;;  %v2863_v47 = vld [vmem:[%s3173_s4] ss:$0 sm:$0xff] }
  0x2e   :  { %2319 = vmatpush3.bf16.msra.mxu0 %v2783_v7 }
  0x2f   :  { %2320 = vmatprep.subr.bf16.mxu0 %v2703_v0 }
  0x30   :  { %2328 = vmatpush3.bf16.msra.mxu1 %v2819_v32 }
  0x31   :  { %2329 = vmatprep.subr.bf16.mxu1 %v2703_v0 }
  0x32   :  { %2322 = vmatpush3.bf16.msra.mxu0 %v2787_v10 }
  0x33   :  { %2335 = vmatprep.subr.bf16.mxu0 %v2703_v0 }
  0x34   :  { %2331 = vmatpush3.bf16.msra.mxu1 %v2823_v35 }
  0x35   :  { %2044 = vmatmul.mubr.msk.f32.vlgmr.msra.gmra.mrb[0].mxu0 %vm86_vm2, %v85_v12  ;;  %2332 = vmatprep.subr.bf16.mxu1 %v2703_v0 }
  0x36   :  { %2337 = vmatpush3.bf16.msra.mxu0 %v2780_v5  ;;  %2077 = vmatprep.mubr.msk.f32.mxu0 %vm2704_vm0, %v2705_v1 }
  0x37   :  { %2338 = vmatprep.subr.bf16.mxu0 %v2703_v0 }
  0x38   :  { %2334 = vmatpush3.bf16.msra.mxu1 %v2828_v39 }
  0x39   :  { %2344 = vmatprep.subr.bf16.mxu1 %v2703_v0 }
  0x3a   :  { %2340 = vmatpush3.bf16.msra.mxu0 %v2783_v7 }
  0x3b   :  { %2341 = vmatprep.subr.bf16.mxu0 %v2703_v0 }
  0x3e   :  { %2343 = vmatpush3.bf16.msra.mxu0 %v2787_v10 }
  0x3f   :  { %2356 = vmatprep.subr.bf16.mxu0 %v2703_v0 }
 0x108   :  { %v156_v14 = vpop.f32.mrb[0].mxu0 }
 0x109   :  { %v157_v15 = vadd.f32 %v2808_v13, %v156_v14  ;;  %v2045_v16 = vpop.f32.mrb[1].mxu0 }
 0x10b   :  { %2499 = vtanh.f32 %v157_v15  ;;  %v1858_v18 = vmul.f32 -1.442695, %v157_v15 }
 0x10d   :  { %2501 = vpow2.f32 %v1858_v18 }
 0x115   :  { %v2500_v17 = vpop.eup %2499 }
 0x116   :  { %169 = vrot.lane.b32.xlu0 %v2500_v17, %s2706_s29 }
 0x117   :  { %v2502_v19 = vpop.eup %2501 }
 0x118   :  { %v163_v20 = vadd.f32 1.0, %v2502_v19 }
 0x11a   :  { %2503 = vrcp.f32 %v163_v20 }
 0x124   :  { %v2504_v21 = vpop.eup %2503 }
 0x125   :  { %v167_v24 = vmul.f32 0.0, %v2504_v21 }
 0x188   :  { %v170_v22 = vpop.permute.xlu0 %169 }
 0x189   :  { %v172_v23 = vmul.f32 %v2504_v21, %v170_v22 }
 0x18b   :  { %174 = vrot.lane.b32.xlu0 %v172_v23, %s2707_s30 }
 0x1fd   :  { %v175_v25 = vpop.permute.xlu0 %174 }
 0x1fe   :  { %v2813_v26 = vadd.f32 %v175_v25, %v167_v24  ;;  %v1866_v25 = vld [vmem:[%s3169_s0 + $0x8] sm:$0xf] }
 0x200   :  { %2505 = vtanh.f32 %v2813_v26 }
 0x20a   :  { %v2506_v38 = vpop.eup %2505 }
 0x20b   :  { %180 = vrot.lane.b32.xlu1 %v2506_v38, %s2706_s29 }
 0x27d   :  { %v181_v40 = vpop.permute.xlu1 %180 }
 0x27e   :  { %v183_v41 = vmul.f32 %v2504_v21, %v181_v40 }
 0x280   :  { %290 = vrot.lane.b32.xlu0 %v183_v41, %s2708_s2  ;;  %185 = vrot.lane.b32.xlu1 %v183_v41, %s2707_s30 }
 0x2f2   :  { %v291_v43 = vpop.permute.xlu0 %290  ;;  %v186_v44 = vpop.permute.xlu1 %185 }
 0x2f3   :  { %v293_v45 = vsel %vm84_vm1, %v1861_v42, %v291_v43  ;;  %v189_v46 = vsel %vm188_vm3, %v186_v44, 0.0 }
 0x2f4   :  { %2063 = vmatmul.mubr.msk.f32.vlgmr.msra.gmra.mrb[0].mxu1 %vm190_vm4, %v189_v46  ;;  %2078 = vmatmul.mubr.msk.f32.vlgmr.msra.gmra.mrb[2].mxu0 %vm86_vm2, %v293_v45 }
 0x2f5   :  { %2346 = vmatpush3.bf16.msra.mxu1 %v2816_v30  ;;  %2358 = vmatpush3.bf16.msra.mxu0 %v2780_v5 }
 0x2f6   :  { %2347 = vmatprep.subr.bf16.mxu1 %v2703_v0  ;;  %2359 = vmatprep.subr.bf16.mxu0 %v2703_v0 }
 0x2f7   :  { %2096 = vmatprep.mubr.msk.f32.mxu1 %vm2704_vm0, %v2705_v1  ;;  %2111 = vmatprep.mubr.msk.f32.mxu0 %vm2704_vm0, %v2705_v1 }
 0x2f9   :  { %2349 = vmatpush3.bf16.msra.mxu1 %v2819_v32  ;;  %2361 = vmatpush3.bf16.msra.mxu0 %v2783_v7 }
 0x2fa   :  { %2350 = vmatprep.subr.bf16.mxu1 %v2703_v0  ;;  %2362 = vmatprep.subr.bf16.mxu0 %v2703_v0 }
 0x2fd   :  { %2352 = vmatpush3.bf16.msra.mxu1 %v2823_v35  ;;  %2364 = vmatpush3.bf16.msra.mxu0 %v2787_v10 }
 0x2fe   :  { %2353 = vmatprep.subr.bf16.mxu1 %v2703_v0  ;;  %2377 = vmatprep.subr.bf16.mxu0 %v2703_v0 }
 0x301   :  { %2355 = vmatpush3.bf16.msra.mxu1 %v2828_v39 }
 0x302   :  { %2365 = vmatprep.subr.bf16.mxu1 %v2703_v0 }
 0x3c7   :  { %v260_v48 = vpop.f32.mrb[0].mxu1  ;;  %v363_v49 = vpop.f32.mrb[2].mxu0 }
 0x3c8   :  { %v261_v50 = vadd.f32 %v2863_v47, %v260_v48  ;;  %v364_v51 = vadd.f32 %v2808_v13, %v363_v49  ;;  %v2064_v52 = vpop.f32.mrb[1].mxu1  ;;  %v2079_v53 = vpop.f32.mrb[3].mxu0 }
 0x3ca   :  { %2507 = vtanh.f32 %v261_v50  ;;  %v1860_v56 = vmul.f32 -1.442695, %v261_v50  ;;  %v1863_v57 = vmul.f32 -1.442695, %v364_v51 }
 0x3cb   :  { %2509 = vtanh.f32 %v364_v51 }
 0x3cc   :  { %2511 = vpow2.f32 %v1860_v56 }
 0x3cd   :  { %2513 = vpow2.f32 %v1863_v57 }
 0x3d4   :  { %v2508_v54 = vpop.eup %2507 }
 0x3d5   :  { %v2510_v55 = vpop.eup %2509  ;;  %273 = vrot.lane.b32.xlu1 %v2508_v54, %s2706_s29 }
 0x3d6   :  { %376 = vrot.lane.b32.xlu0 %v2510_v55, %s2706_s29  ;;  %v2512_v58 = vpop.eup %2511 }
 0x3d7   :  { %v2514_v59 = vpop.eup %2513  ;;  %v267_v60 = vadd.f32 1.0, %v2512_v58 }
 0x3d8   :  { %v370_v61 = vadd.f32 1.0, %v2514_v59 }
 0x3d9   :  { %2515 = vrcp.f32 %v267_v60 }
 0x3da   :  { %2517 = vrcp.f32 %v370_v61 }
 0x3e3   :  { %v2516_v62 = vpop.eup %2515 }
 0x3e4   :  { %v2518_v2 = vpop.eup %2517  ;;  %v271_v8 = vmul.f32 0.0, %v2516_v62 }
 0x3e5   :  { %v374_v11 = vmul.f32 %v2518_v2, %v2813_v26 }
 0x447   :  { %v274_v63 = vpop.permute.xlu1 %273 }
 0x448   :  { %v276_v3 = vmul.f32 %v2516_v62, %v274_v63  ;;  %v377_v4 = vpop.permute.xlu0 %376 }
 0x449   :  { %v379_v6 = vmul.f32 %v2518_v2, %v377_v4 }
 0x44a   :  { %278 = vrot.lane.b32.xlu1 %v276_v3, %s2707_s30 }
 0x44b   :  { %381 = vrot.lane.b32.xlu0 %v379_v6, %s2707_s30 }
 0x4bc   :  { %v279_v9 = vpop.permute.xlu1 %278 }
 0x4bd   :  { %v2872_v12 = vadd.f32 %v279_v9, %v271_v8  ;;  %v382_v14 = vpop.permute.xlu0 %381  ;;  %v1871_v8 = vld [vmem:[%s3169_s0 + $0xc] sm:$0xf] }
 0x4be   :  { %v2874_v15 = vadd.f32 %v382_v14, %v374_v11 }
 0x4bf   :  { %2519 = vtanh.f32 %v2872_v12 }
 0x4c0   :  { %2521 = vtanh.f32 %v2874_v15 }
 0x4c9   :  { %v2520_v16 = vpop.eup %2519 }
 0x4ca   :  { %v2522_v17 = vpop.eup %2521  ;;  %284 = vrot.lane.b32.xlu1 %v2520_v16, %s2706_s29 }
 0x4cb   :  { %387 = vrot.lane.b32.xlu0 %v2522_v17, %s2706_s29 }
 0x53c   :  { %v285_v18 = vpop.permute.xlu1 %284 }
 0x53d   :  { %v287_v19 = vmul.f32 %v2516_v62, %v285_v18  ;;  %v388_v20 = vpop.permute.xlu0 %387 }
 0x53e   :  { %v390_v21 = vmul.f32 %v2518_v2, %v388_v20 }
 0x53f   :  { %396 = vrot.lane.b32.xlu0 %v287_v19, %s2706_s29 }
 0x540   :  { %392 = vrot.lane.b32.xlu1 %v390_v21, %s2707_s30 }
 0x544   :  { %499 = vrot.lane.b32.xlu1 %v390_v21, %s2708_s2 }
 0x5b1   :  { %v397_v22 = vpop.permute.xlu0 %396 }
 0x5b2   :  { %v393_v23 = vpop.permute.xlu1 %392 }
 0x5b3   :  { %v399_v24 = vsel %vm188_vm3, %v393_v23, %v397_v22 }
 0x5b4   :  { %2097 = vmatmul.mubr.msk.f32.vlgmr.msra.gmra.mrb[2].mxu1 %vm190_vm4, %v399_v24 }
 0x5b5   :  { %2367 = vmatpush3.bf16.msra.mxu1 %v2816_v30  ;;  %2130 = vmatprep.mubr.msk.f32.mxu1 %vm2704_vm0, %v2705_v1 }
 0x5b6   :  { %v500_v26 = vpop.permute.xlu1 %499  ;;  %2368 = vmatprep.subr.bf16.mxu1 %v2703_v0 }
 0x5b7   :  { %v502_v27 = vsel %vm84_vm1, %v1866_v25, %v500_v26 }
 0x5b8   :  { %2112 = vmatmul.mubr.msk.f32.vlgmr.msra.gmra.mrb[4].mxu0 %vm86_vm2, %v502_v27 }
 0x5b9   :  { %2370 = vmatpush3.bf16.msra.mxu1 %v2819_v32  ;;  %2379 = vmatpush3.bf16.msra.mxu0 %v2780_v5 }
 0x5ba   :  { %2371 = vmatprep.subr.bf16.mxu1 %v2703_v0  ;;  %2380 = vmatprep.subr.bf16.mxu0 %v2703_v0 }
 0x5bb   :  { %2145 = vmatprep.mubr.msk.f32.mxu0 %vm2704_vm0, %v2705_v1 }
 0x5bd   :  { %2373 = vmatpush3.bf16.msra.mxu1 %v2823_v35  ;;  %2382 = vmatpush3.bf16.msra.mxu0 %v2783_v7 }
 0x5be   :  { %2374 = vmatprep.subr.bf16.mxu1 %v2703_v0  ;;  %2383 = vmatprep.subr.bf16.mxu0 %v2703_v0 }
 0x5c1   :  { %2376 = vmatpush3.bf16.msra.mxu1 %v2828_v39  ;;  %2385 = vmatpush3.bf16.msra.mxu0 %v2787_v10 }
 0x5c2   :  { %2386 = vmatprep.subr.bf16.mxu0 %v2703_v0  ;;  %2398 = vmatprep.subr.bf16.mxu1 %v2703_v0 }
 0x687   :  { %v469_v28 = vpop.f32.mrb[2].mxu1 }
 0x688   :  { %v470_v29 = vadd.f32 %v2863_v47, %v469_v28  ;;  %v2098_v31 = vpop.f32.mrb[3].mxu1 }
 0x68a   :  { %2523 = vtanh.f32 %v470_v29  ;;  %v1865_v40 = vmul.f32 -1.442695, %v470_v29 }
 0x68b   :  { %v572_v33 = vpop.f32.mrb[4].mxu0 }
 0x68c   :  { %v573_v34 = vadd.f32 %v2808_v13, %v572_v33  ;;  %v2113_v36 = vpop.f32.mrb[5].mxu0 }
 0x68e   :  { %2525 = vtanh.f32 %v573_v34  ;;  %v1868_v41 = vmul.f32 -1.442695, %v573_v34 }
 0x68f   :  { %2527 = vpow2.f32 %v1865_v40 }
 0x690   :  { %2529 = vpow2.f32 %v1868_v41 }
 0x694   :  { %v2524_v37 = vpop.eup %2523 }
 0x695   :  { %482 = vrot.lane.b32.xlu0 %v2524_v37, %s2706_s29 }
 0x698   :  { %v2526_v38 = vpop.eup %2525 }
 0x699   :  { %585 = vrot.lane.b32.xlu1 %v2526_v38, %s2706_s29  ;;  %v2528_v42 = vpop.eup %2527 }
 0x69a   :  { %v476_v43 = vadd.f32 1.0, %v2528_v42  ;;  %v2530_v44 = vpop.eup %2529 }
 0x69b   :  { %v579_v45 = vadd.f32 1.0, %v2530_v44 }
 0x69c   :  { %2531 = vrcp.f32 %v476_v43 }
 0x69d   :  { %2533 = vrcp.f32 %v579_v45 }
 0x6a6   :  { %v2532_v46 = vpop.eup %2531 }
 0x6a7   :  { %v2534_v50 = vpop.eup %2533  ;;  %v480_v53 = vmul.f32 %v2532_v46, %v2872_v12 }
 0x6a8   :  { %v583_v56 = vmul.f32 %v2534_v50, %v2874_v15 }
 0x707   :  { %v483_v48 = vpop.permute.xlu0 %482 }
 0x708   :  { %v485_v49 = vmul.f32 %v2532_v46, %v483_v48 }
 0x70a   :  { %487 = vrot.lane.b32.xlu0 %v485_v49, %s2707_s30 }
 0x70b   :  { %v586_v51 = vpop.permute.xlu1 %585 }
 0x70c   :  { %v588_v52 = vmul.f32 %v2534_v50, %v586_v51 }
 0x70e   :  { %590 = vrot.lane.b32.xlu1 %v588_v52, %s2707_s30 }
 0x77c   :  { %v488_v54 = vpop.permute.xlu0 %487 }
 0x77d   :  { %v2915_v55 = vadd.f32 %v488_v54, %v480_v53  ;;  %v1876_v53 = vld [vmem:[%s3169_s0 + $0x10] sm:$0xf] }
 0x77f   :  { %2535 = vtanh.f32 %v2915_v55 }
 0x780   :  { %v591_v57 = vpop.permute.xlu1 %590 }
 0x781   :  { %v2919_v58 = vadd.f32 %v591_v57, %v583_v56 }
 0x783   :  { %2537 = vtanh.f32 %v2919_v58 }
 0x789   :  { %v2536_v59 = vpop.eup %2535 }
 0x78a   :  { %493 = vrot.lane.b32.xlu0 %v2536_v59, %s2706_s29 }
 0x78d   :  { %v2538_v60 = vpop.eup %2537 }
 0x78e   :  { %596 = vrot.lane.b32.xlu1 %v2538_v60, %s2706_s29 }
 0x7fc   :  { %v494_v61 = vpop.permute.xlu0 %493 }
 0x7fd   :  { %v496_v62 = vmul.f32 %v2532_v46, %v494_v61 }
 0x7ff   :  { %605 = vrot.lane.b32.xlu1 %v496_v62, %s2706_s29 }
 0x800   :  { %v597_v63 = vpop.permute.xlu1 %596 }
 0x801   :  { %v599_v2 = vmul.f32 %v2534_v50, %v597_v63 }
 0x803   :  { %601 = vrot.lane.b32.xlu0 %v599_v2, %s2707_s30 }
 0x807   :  { %708 = vrot.lane.b32.xlu0 %v599_v2, %s2708_s2 }
 0x871   :  { %v606_v3 = vpop.permute.xlu1 %605 }
 0x875   :  { %v602_v4 = vpop.permute.xlu0 %601 }
 0x876   :  { %v608_v6 = vsel %vm188_vm3, %v602_v4, %v606_v3 }
 0x877   :  { %2131 = vmatmul.mubr.msk.f32.vlgmr.msra.gmra.mrb[4].mxu1 %vm190_vm4, %v608_v6 }
 0x878   :  { %2400 = vmatpush3.bf16.msra.mxu1 %v2780_v5  ;;  %2179 = vmatprep.mubr.msk.f32.mxu1 %vm2704_vm0, %v2705_v1 }
 0x879   :  { %v709_v9 = vpop.permute.xlu0 %708  ;;  %2401 = vmatprep.subr.bf16.mxu1 %v2703_v0 }
 0x87a   :  { %v711_v11 = vsel %vm84_vm1, %v1871_v8, %v709_v9 }
 0x87b   :  { %2146 = vmatmul.mubr.msk.f32.vlgmr.msra.gmra.mrb[6].mxu0 %vm86_vm2, %v711_v11 }
 0x87c   :  { %2388 = vmatpush3.bf16.msra.mxu0 %v2816_v30  ;;  %2403 = vmatpush3.bf16.msra.mxu1 %v2783_v7 }
 0x87d   :  { %2389 = vmatprep.subr.bf16.mxu0 %v2703_v0  ;;  %2164 = vmatprep.mubr.msk.f32.mxu0 %vm2704_vm0, %v2705_v1 }
 0x87e   :  { %2404 = vmatprep.subr.bf16.mxu1 %v2703_v0 }
 0x880   :  { %2391 = vmatpush3.bf16.msra.mxu0 %v2819_v32  ;;  %2406 = vmatpush3.bf16.msra.mxu1 %v2787_v10 }
 0x881   :  { %2392 = vmatprep.subr.bf16.mxu0 %v2703_v0  ;;  %2407 = vmatprep.subr.bf16.mxu1 %v2703_v0 }
 0x884   :  { %2394 = vmatpush3.bf16.msra.mxu0 %v2823_v35 }
 0x885   :  { %2395 = vmatprep.subr.bf16.mxu0 %v2703_v0 }
 0x888   :  { %2397 = vmatpush3.bf16.msra.mxu0 %v2828_v39 }
 0x889   :  { %2419 = vmatprep.subr.bf16.mxu0 %v2703_v0 }
 0x94a   :  { %v678_v12 = vpop.f32.mrb[4].mxu1 }
 0x94b   :  { %v679_v14 = vadd.f32 %v2863_v47, %v678_v12  ;;  %v2132_v15 = vpop.f32.mrb[5].mxu1 }
 0x94d   :  { %2539 = vtanh.f32 %v679_v14  ;;  %v1870_v21 = vmul.f32 -1.442695, %v679_v14 }
 0x94e   :  { %v781_v16 = vpop.f32.mrb[6].mxu0 }
 0x94f   :  { %v782_v17 = vadd.f32 %v2808_v13, %v781_v16  ;;  %v2147_v18 = vpop.f32.mrb[7].mxu0 }
 0x951   :  { %2541 = vtanh.f32 %v782_v17  ;;  %v1873_v22 = vmul.f32 -1.442695, %v782_v17 }
 0x952   :  { %2543 = vpow2.f32 %v1870_v21 }
 0x953   :  { %2545 = vpow2.f32 %v1873_v22 }
 0x957   :  { %v2540_v19 = vpop.eup %2539 }
 0x958   :  { %691 = vrot.lane.b32.xlu1 %v2540_v19, %s2706_s29 }
 0x95b   :  { %v2542_v20 = vpop.eup %2541 }
 0x95c   :  { %794 = vrot.lane.b32.xlu0 %v2542_v20, %s2706_s29  ;;  %v2544_v23 = vpop.eup %2543 }
 0x95d   :  { %v685_v24 = vadd.f32 1.0, %v2544_v23  ;;  %v2546_v25 = vpop.eup %2545 }
 0x95e   :  { %v788_v26 = vadd.f32 1.0, %v2546_v25 }
 0x95f   :  { %2547 = vrcp.f32 %v685_v24 }
 0x960   :  { %2549 = vrcp.f32 %v788_v26 }
 0x969   :  { %v2548_v27 = vpop.eup %2547 }
 0x96a   :  { %v2550_v31 = vpop.eup %2549  ;;  %v689_v36 = vmul.f32 %v2548_v27, %v2915_v55 }
 0x96b   :  { %v792_v40 = vmul.f32 %v2550_v31, %v2919_v58 }
 0x9ca   :  { %v692_v28 = vpop.permute.xlu1 %691 }
 0x9cb   :  { %v694_v29 = vmul.f32 %v2548_v27, %v692_v28 }
 0x9cd   :  { %696 = vrot.lane.b32.xlu1 %v694_v29, %s2707_s30 }
 0x9ce   :  { %v795_v33 = vpop.permute.xlu0 %794 }
 0x9cf   :  { %v797_v34 = vmul.f32 %v2550_v31, %v795_v33 }
 0x9d1   :  { %799 = vrot.lane.b32.xlu0 %v797_v34, %s2707_s30 }
 0xa3f   :  { %v697_v37 = vpop.permute.xlu1 %696 }
 0xa40   :  { %v2959_v38 = vadd.f32 %v697_v37, %v689_v36  ;;  %v1881_v36 = vld [vmem:[%s3169_s0 + $0x14] sm:$0xf] }
 0xa42   :  { %2551 = vtanh.f32 %v2959_v38 }
 0xa43   :  { %v800_v41 = vpop.permute.xlu0 %799 }
 0xa44   :  { %v2963_v42 = vadd.f32 %v800_v41, %v792_v40 }
 0xa46   :  { %2553 = vtanh.f32 %v2963_v42 }
 0xa4c   :  { %v2552_v43 = vpop.eup %2551 }
 0xa4d   :  { %702 = vrot.lane.b32.xlu1 %v2552_v43, %s2706_s29 }
 0xa50   :  { %v2554_v44 = vpop.eup %2553 }
 0xa51   :  { %805 = vrot.lane.b32.xlu0 %v2554_v44, %s2706_s29 }
 0xabf   :  { %v703_v45 = vpop.permute.xlu1 %702 }
 0xac0   :  { %v705_v46 = vmul.f32 %v2548_v27, %v703_v45 }
 0xac2   :  { %814 = vrot.lane.b32.xlu0 %v705_v46, %s2706_s29 }
 0xac3   :  { %v806_v48 = vpop.permute.xlu0 %805 }
 0xac4   :  { %v808_v49 = vmul.f32 %v2550_v31, %v806_v48 }
 0xac6   :  { %810 = vrot.lane.b32.xlu1 %v808_v49, %s2707_s30 }
 0xaca   :  { %917 = vrot.lane.b32.xlu1 %v808_v49, %s2708_s2 }
 0xb34   :  { %v815_v50 = vpop.permute.xlu0 %814 }
 0xb38   :  { %v811_v51 = vpop.permute.xlu1 %810 }
 0xb39   :  { %v817_v52 = vsel %vm188_vm3, %v811_v51, %v815_v50 }
 0xb3a   :  { %2165 = vmatmul.mubr.msk.f32.vlgmr.msra.gmra.mrb[8].mxu0 %vm190_vm4, %v817_v52 }
 0xb3b   :  { %2421 = vmatpush3.bf16.msra.mxu0 %v2780_v5  ;;  %2213 = vmatprep.mubr.msk.f32.mxu0 %vm2704_vm0, %v2705_v1 }
 0xb3c   :  { %v918_v54 = vpop.permute.xlu1 %917  ;;  %2422 = vmatprep.subr.bf16.mxu0 %v2703_v0 }
 0xb3d   :  { %v920_v55 = vsel %vm84_vm1, %v1876_v53, %v918_v54 }
 0xb3e   :  { %2180 = vmatmul.mubr.msk.f32.vlgmr.msra.gmra.mrb[6].mxu1 %vm86_vm2, %v920_v55 }
 0xb3f   :  { %2409 = vmatpush3.bf16.msra.mxu1 %v2816_v30  ;;  %2424 = vmatpush3.bf16.msra.mxu0 %v2783_v7 }
 0xb40   :  { %2410 = vmatprep.subr.bf16.mxu1 %v2703_v0  ;;  %2198 = vmatprep.mubr.msk.f32.mxu1 %vm2704_vm0, %v2705_v1 }
 0xb41   :  { %2425 = vmatprep.subr.bf16.mxu0 %v2703_v0 }
 0xb43   :  { %2412 = vmatpush3.bf16.msra.mxu1 %v2819_v32  ;;  %2427 = vmatpush3.bf16.msra.mxu0 %v2787_v10 }
 0xb44   :  { %2413 = vmatprep.subr.bf16.mxu1 %v2703_v0  ;;  %2428 = vmatprep.subr.bf16.mxu0 %v2703_v0 }
 0xb47   :  { %2415 = vmatpush3.bf16.msra.mxu1 %v2823_v35 }
 0xb48   :  { %2416 = vmatprep.subr.bf16.mxu1 %v2703_v0 }
 0xb4b   :  { %2418 = vmatpush3.bf16.msra.mxu1 %v2828_v39 }
 0xb4c   :  { %2440 = vmatprep.subr.bf16.mxu1 %v2703_v0 }
 0xc0d   :  { %v887_v56 = vpop.f32.mrb[8].mxu0 }
 0xc0e   :  { %v888_v57 = vadd.f32 %v2863_v47, %v887_v56  ;;  %v2166_v58 = vpop.f32.mrb[9].mxu0 }
 0xc10   :  { %2555 = vtanh.f32 %v888_v57  ;;  %v1875_v2 = vmul.f32 -1.442695, %v888_v57 }
 0xc11   :  { %v990_v59 = vpop.f32.mrb[6].mxu1 }
 0xc12   :  { %v991_v60 = vadd.f32 %v2808_v13, %v990_v59  ;;  %v2181_v61 = vpop.f32.mrb[7].mxu1 }
 0xc14   :  { %2557 = vtanh.f32 %v991_v60  ;;  %v1878_v3 = vmul.f32 -1.442695, %v991_v60 }
 0xc15   :  { %2559 = vpow2.f32 %v1875_v2 }
 0xc16   :  { %2561 = vpow2.f32 %v1878_v3 }
 0xc1a   :  { %v2556_v62 = vpop.eup %2555 }
 0xc1b   :  { %900 = vrot.lane.b32.xlu0 %v2556_v62, %s2706_s29 }
 0xc1e   :  { %v2558_v63 = vpop.eup %2557 }
 0xc1f   :  { %1003 = vrot.lane.b32.xlu1 %v2558_v63, %s2706_s29  ;;  %v2560_v4 = vpop.eup %2559 }
 0xc20   :  { %v894_v6 = vadd.f32 1.0, %v2560_v4  ;;  %v2562_v8 = vpop.eup %2561 }
 0xc21   :  { %v997_v9 = vadd.f32 1.0, %v2562_v8 }
 0xc22   :  { %2563 = vrcp.f32 %v894_v6 }
 0xc23   :  { %2565 = vrcp.f32 %v997_v9 }
 0xc2c   :  { %v2564_v11 = vpop.eup %2563 }
 0xc2d   :  { %v2566_v15 = vpop.eup %2565  ;;  %v898_v18 = vmul.f32 %v2564_v11, %v2959_v38 }
 0xc2e   :  { %v1001_v21 = vmul.f32 %v2566_v15, %v2963_v42 }
 0xc8d   :  { %v901_v12 = vpop.permute.xlu0 %900 }
 0xc8e   :  { %v903_v14 = vmul.f32 %v2564_v11, %v901_v12 }
 0xc90   :  { %905 = vrot.lane.b32.xlu0 %v903_v14, %s2707_s30 }
 0xc91   :  { %v1004_v16 = vpop.permute.xlu1 %1003 }
 0xc92   :  { %v1006_v17 = vmul.f32 %v2566_v15, %v1004_v16 }
 0xc94   :  { %1008 = vrot.lane.b32.xlu1 %v1006_v17, %s2707_s30 }
 0xd02   :  { %v906_v19 = vpop.permute.xlu0 %905 }
 0xd03   :  { %v3003_v20 = vadd.f32 %v906_v19, %v898_v18  ;;  %v1886_v18 = vld [vmem:[%s3169_s0 + $0x18] sm:$0xf] }
 0xd05   :  { %2567 = vtanh.f32 %v3003_v20 }
 0xd06   :  { %v1009_v22 = vpop.permute.xlu1 %1008 }
 0xd07   :  { %v3007_v23 = vadd.f32 %v1009_v22, %v1001_v21 }
 0xd09   :  { %2569 = vtanh.f32 %v3007_v23 }
 0xd0f   :  { %v2568_v24 = vpop.eup %2567 }
 0xd10   :  { %911 = vrot.lane.b32.xlu0 %v2568_v24, %s2706_s29 }
 0xd13   :  { %v2570_v25 = vpop.eup %2569 }
 0xd14   :  { %1014 = vrot.lane.b32.xlu1 %v2570_v25, %s2706_s29 }
 0xd82   :  { %v912_v26 = vpop.permute.xlu0 %911 }
 0xd83   :  { %v914_v27 = vmul.f32 %v2564_v11, %v912_v26 }
 0xd85   :  { %1023 = vrot.lane.b32.xlu1 %v914_v27, %s2706_s29 }
 0xd86   :  { %v1015_v28 = vpop.permute.xlu1 %1014 }
 0xd87   :  { %v1017_v29 = vmul.f32 %v2566_v15, %v1015_v28 }
 0xd89   :  { %1019 = vrot.lane.b32.xlu0 %v1017_v29, %s2707_s30 }
 0xd8d   :  { %1126 = vrot.lane.b32.xlu0 %v1017_v29, %s2708_s2 }
 0xdf7   :  { %v1024_v31 = vpop.permute.xlu1 %1023 }
 0xdfb   :  { %v1020_v33 = vpop.permute.xlu0 %1019 }
 0xdfc   :  { %v1026_v34 = vsel %vm188_vm3, %v1020_v33, %v1024_v31 }
 0xdfd   :  { %2199 = vmatmul.mubr.msk.f32.vlgmr.msra.gmra.mrb[8].mxu1 %vm190_vm4, %v1026_v34 }
 0xdfe   :  { %2442 = vmatpush3.bf16.msra.mxu1 %v2780_v5  ;;  %2247 = vmatprep.mubr.msk.f32.mxu1 %vm2704_vm0, %v2705_v1 }
 0xdff   :  { %v1127_v37 = vpop.permute.xlu0 %1126  ;;  %2443 = vmatprep.subr.bf16.mxu1 %v2703_v0 }
 0xe00   :  { %v1129_v38 = vsel %vm84_vm1, %v1881_v36, %v1127_v37 }
 0xe01   :  { %2214 = vmatmul.mubr.msk.f32.vlgmr.msra.gmra.mrb[10].mxu0 %vm86_vm2, %v1129_v38 }
 0xe02   :  { %2430 = vmatpush3.bf16.msra.mxu0 %v2816_v30  ;;  %2445 = vmatpush3.bf16.msra.mxu1 %v2783_v7 }
 0xe03   :  { %2431 = vmatprep.subr.bf16.mxu0 %v2703_v0  ;;  %2232 = vmatprep.mubr.msk.f32.mxu0 %vm2704_vm0, %v2705_v1 }
 0xe04   :  { %2446 = vmatprep.subr.bf16.mxu1 %v2703_v0 }
 0xe06   :  { %2433 = vmatpush3.bf16.msra.mxu0 %v2819_v32  ;;  %2448 = vmatpush3.bf16.msra.mxu1 %v2787_v10 }
 0xe07   :  { %2434 = vmatprep.subr.bf16.mxu0 %v2703_v0  ;;  %2449 = vmatprep.subr.bf16.mxu1 %v2703_v0 }
 0xe0a   :  { %2436 = vmatpush3.bf16.msra.mxu0 %v2823_v35 }
 0xe0b   :  { %2437 = vmatprep.subr.bf16.mxu0 %v2703_v0 }
 0xe0e   :  { %2439 = vmatpush3.bf16.msra.mxu0 %v2828_v39 }
 0xe0f   :  { %2461 = vmatprep.subr.bf16.mxu0 %v2703_v0 }
 0xed0   :  { %v1096_v40 = vpop.f32.mrb[8].mxu1 }
 0xed1   :  { %v1097_v41 = vadd.f32 %v2863_v47, %v1096_v40  ;;  %v2200_v42 = vpop.f32.mrb[9].mxu1 }
 0xed3   :  { %2571 = vtanh.f32 %v1097_v41  ;;  %v1880_v49 = vmul.f32 -1.442695, %v1097_v41 }
 0xed4   :  { %v1199_v43 = vpop.f32.mrb[10].mxu0 }
 0xed5   :  { %v1200_v44 = vadd.f32 %v2808_v13, %v1199_v43  ;;  %v2215_v45 = vpop.f32.mrb[11].mxu0 }
 0xed7   :  { %2573 = vtanh.f32 %v1200_v44  ;;  %v1883_v50 = vmul.f32 -1.442695, %v1200_v44 }
 0xed8   :  { %2575 = vpow2.f32 %v1880_v49 }
 0xed9   :  { %2577 = vpow2.f32 %v1883_v50 }
 0xedd   :  { %v2572_v46 = vpop.eup %2571 }
 0xede   :  { %1109 = vrot.lane.b32.xlu1 %v2572_v46, %s2706_s29 }
 0xee1   :  { %v2574_v48 = vpop.eup %2573 }
 0xee2   :  { %1212 = vrot.lane.b32.xlu0 %v2574_v48, %s2706_s29  ;;  %v2576_v51 = vpop.eup %2575 }
 0xee3   :  { %v1103_v52 = vadd.f32 1.0, %v2576_v51  ;;  %v2578_v53 = vpop.eup %2577 }
 0xee4   :  { %v1206_v54 = vadd.f32 1.0, %v2578_v53 }
 0xee5   :  { %2579 = vrcp.f32 %v1103_v52 }
 0xee6   :  { %2581 = vrcp.f32 %v1206_v54 }
 0xeef   :  { %v2580_v55 = vpop.eup %2579 }
 0xef0   :  { %v2582_v58 = vpop.eup %2581  ;;  %v1107_v61 = vmul.f32 %v2580_v55, %v3003_v20 }
 0xef1   :  { %v1210_v2 = vmul.f32 %v2582_v58, %v3007_v23 }
 0xf50   :  { %v1110_v56 = vpop.permute.xlu1 %1109 }
 0xf51   :  { %v1112_v57 = vmul.f32 %v2580_v55, %v1110_v56 }
 0xf53   :  { %1114 = vrot.lane.b32.xlu1 %v1112_v57, %s2707_s30 }
 0xf54   :  { %v1213_v59 = vpop.permute.xlu0 %1212 }
 0xf55   :  { %v1215_v60 = vmul.f32 %v2582_v58, %v1213_v59 }
 0xf57   :  { %1217 = vrot.lane.b32.xlu0 %v1215_v60, %s2707_s30 }
 0xfc5   :  { %v1115_v62 = vpop.permute.xlu1 %1114 }
 0xfc6   :  { %v3047_v63 = vadd.f32 %v1115_v62, %v1107_v61 }
 0xfc8   :  { %2583 = vtanh.f32 %v3047_v63 }
 0xfc9   :  { %v1218_v3 = vpop.permute.xlu0 %1217 }
 0xfca   :  { %v3051_v4 = vadd.f32 %v1218_v3, %v1210_v2 }
 0xfcc   :  { %2585 = vtanh.f32 %v3051_v4 }
 0xfd2   :  { %v2584_v6 = vpop.eup %2583 }
 0xfd3   :  { %1120 = vrot.lane.b32.xlu1 %v2584_v6, %s2706_s29 }
 0xfd6   :  { %v2586_v8 = vpop.eup %2585 }
 0xfd7   :  { %1223 = vrot.lane.b32.xlu0 %v2586_v8, %s2706_s29 }
0x1045   :  { %v1121_v9 = vpop.permute.xlu1 %1120 }
0x1046   :  { %v1123_v11 = vmul.f32 %v2580_v55, %v1121_v9 }
0x1048   :  { %1232 = vrot.lane.b32.xlu0 %v1123_v11, %s2706_s29 }
0x1049   :  { %v1224_v12 = vpop.permute.xlu0 %1223 }
0x104a   :  { %v1226_v14 = vmul.f32 %v2582_v58, %v1224_v12  ;;  %v1891_v58 = vld [vmem:[%s3169_s0 + $0x1c] sm:$0xf] }
0x104c   :  { %1228 = vrot.lane.b32.xlu1 %v1226_v14, %s2707_s30 }
0x1050   :  { %1335 = vrot.lane.b32.xlu1 %v1226_v14, %s2708_s2 }
0x10ba   :  { %v1233_v15 = vpop.permute.xlu0 %1232 }
0x10be   :  { %v1229_v16 = vpop.permute.xlu1 %1228 }
0x10bf   :  { %v1235_v17 = vsel %vm188_vm3, %v1229_v16, %v1233_v15 }
0x10c0   :  { %2233 = vmatmul.mubr.msk.f32.vlgmr.msra.gmra.mrb[12].mxu0 %vm190_vm4, %v1235_v17 }
0x10c1   :  { %2463 = vmatpush3.bf16.msra.mxu0 %v2780_v5  ;;  %2281 = vmatprep.mubr.msk.f32.mxu0 %vm2704_vm0, %v2705_v1 }
0x10c2   :  { %v1336_v19 = vpop.permute.xlu1 %1335  ;;  %2464 = vmatprep.subr.bf16.mxu0 %v2703_v0 }
0x10c3   :  { %v1338_v20 = vsel %vm84_vm1, %v1886_v18, %v1336_v19 }
0x10c4   :  { %2248 = vmatmul.mubr.msk.f32.vlgmr.msra.gmra.mrb[10].mxu1 %vm86_vm2, %v1338_v20 }
0x10c5   :  { %2451 = vmatpush3.bf16.msra.mxu1 %v2816_v30  ;;  %2466 = vmatpush3.bf16.msra.mxu0 %v2783_v7 }
0x10c6   :  { %2452 = vmatprep.subr.bf16.mxu1 %v2703_v0  ;;  %2266 = vmatprep.mubr.msk.f32.mxu1 %vm2704_vm0, %v2705_v1 }
0x10c7   :  { %2467 = vmatprep.subr.bf16.mxu0 %v2703_v0 }
0x10c9   :  { %2454 = vmatpush3.bf16.msra.mxu1 %v2819_v32  ;;  %2469 = vmatpush3.bf16.msra.mxu0 %v2787_v10 }
0x10ca   :  { %2455 = vmatprep.subr.bf16.mxu1 %v2703_v0  ;;  %2470 = vmatprep.subr.bf16.mxu0 %v2703_v0 }
0x10cd   :  { %2457 = vmatpush3.bf16.msra.mxu1 %v2823_v35 }
0x10ce   :  { %2458 = vmatprep.subr.bf16.mxu1 %v2703_v0 }
0x10d1   :  { %2460 = vmatpush3.bf16.msra.mxu1 %v2828_v39 }
0x10d2   :  { %2482 = vmatprep.subr.bf16.mxu1 %v2703_v0 }
0x1193   :  { %v1305_v5 = vpop.f32.mrb[12].mxu0 }
0x1194   :  { %v1306_v7 = vadd.f32 %v2863_v47, %v1305_v5  ;;  %v2234_v21 = vpop.f32.mrb[13].mxu0 }
0x1196   :  { %2587 = vtanh.f32 %v1306_v7  ;;  %v1885_v26 = vmul.f32 -1.442695, %v1306_v7 }
0x1197   :  { %v1408_v22 = vpop.f32.mrb[10].mxu1 }
0x1198   :  { %v1409_v10 = vadd.f32 %v2808_v13, %v1408_v22  ;;  %v2249_v23 = vpop.f32.mrb[11].mxu1 }
0x119a   :  { %2589 = vtanh.f32 %v1409_v10  ;;  %v1888_v27 = vmul.f32 -1.442695, %v1409_v10 }
0x119b   :  { %2591 = vpow2.f32 %v1885_v26 }
0x119c   :  { %2593 = vpow2.f32 %v1888_v27 }
0x11a0   :  { %v2588_v24 = vpop.eup %2587 }
0x11a1   :  { %1318 = vrot.lane.b32.xlu0 %v2588_v24, %s2706_s29 }
0x11a4   :  { %v2590_v25 = vpop.eup %2589 }
0x11a5   :  { %1421 = vrot.lane.b32.xlu1 %v2590_v25, %s2706_s29  ;;  %v2592_v28 = vpop.eup %2591 }
0x11a6   :  { %v1312_v29 = vadd.f32 1.0, %v2592_v28  ;;  %v2594_v31 = vpop.eup %2593 }
0x11a7   :  { %v1415_v33 = vadd.f32 1.0, %v2594_v31 }
0x11a8   :  { %2595 = vrcp.f32 %v1312_v29 }
0x11a9   :  { %2597 = vrcp.f32 %v1415_v33 }
0x11b2   :  { %v2596_v34 = vpop.eup %2595 }
0x11b3   :  { %v2598_v38 = vpop.eup %2597  ;;  %v1316_v42 = vmul.f32 %v2596_v34, %v3047_v63 }
0x11b4   :  { %v1419_v45 = vmul.f32 %v2598_v38, %v3051_v4 }
0x1213   :  { %v1319_v36 = vpop.permute.xlu0 %1318 }
0x1214   :  { %v1321_v37 = vmul.f32 %v2596_v34, %v1319_v36 }
0x1216   :  { %1323 = vrot.lane.b32.xlu0 %v1321_v37, %s2707_s30 }
0x1217   :  { %v1422_v40 = vpop.permute.xlu1 %1421 }
0x1218   :  { %v1424_v41 = vmul.f32 %v2598_v38, %v1422_v40 }
0x121a   :  { %1426 = vrot.lane.b32.xlu1 %v1424_v41, %s2707_s30 }
0x1288   :  { %v1324_v43 = vpop.permute.xlu0 %1323 }
0x1289   :  { %v3091_v44 = vadd.f32 %v1324_v43, %v1316_v42 }
0x128b   :  { %2599 = vtanh.f32 %v3091_v44 }
0x128c   :  { %v1427_v46 = vpop.permute.xlu1 %1426 }
0x128d   :  { %v3095_v48 = vadd.f32 %v1427_v46, %v1419_v45  ;;  %v1752_v46 = vld [vmem:[%s3174_s5 + $0x8] sm:$0xff] }
0x128f   :  { %2601 = vtanh.f32 %v3095_v48 }
0x1295   :  { %v2600_v49 = vpop.eup %2599 }
0x1296   :  { %1329 = vrot.lane.b32.xlu0 %v2600_v49, %s2706_s29 }
0x1299   :  { %v2602_v50 = vpop.eup %2601 }
0x129a   :  { %1432 = vrot.lane.b32.xlu1 %v2602_v50, %s2706_s29  ;;  %v1754_v50 = vld [vmem:[%s3174_s5 + $0x18] sm:$0xff] }
0x1308   :  { %v1330_v51 = vpop.permute.xlu0 %1329 }
0x1309   :  { %v1332_v52 = vmul.f32 %v2596_v34, %v1330_v51 }
0x130b   :  { %1441 = vrot.lane.b32.xlu1 %v1332_v52, %s2706_s29 }
0x130c   :  { %v1433_v53 = vpop.permute.xlu1 %1432 }
0x130d   :  { %v1435_v54 = vmul.f32 %v2598_v38, %v1433_v53 }
0x130f   :  { %1437 = vrot.lane.b32.xlu0 %v1435_v54, %s2707_s30 }
0x1313   :  { %1544 = vrot.lane.b32.xlu0 %v1435_v54, %s2708_s2 }
0x137d   :  { %v1442_v55 = vpop.permute.xlu1 %1441 }
0x1381   :  { %v1438_v56 = vpop.permute.xlu0 %1437 }
0x1382   :  { %v1444_v57 = vsel %vm188_vm3, %v1438_v56, %v1442_v55  ;;  %v1896_v56 = vld [vmem:[%s3175_s6] ss:$0 sm:$0xff] }
0x1383   :  { %2267 = vmatmul.mubr.msk.f32.vlgmr.msra.gmra.mrb[12].mxu1 %vm190_vm4, %v1444_v57 }
0x1384   :  { %2311 = vmatprep.mubr.msk.f32.mxu1 %vm2704_vm0, %v2705_v1 }
0x1385   :  { %v1545_v59 = vpop.permute.xlu0 %1544 }
0x1386   :  { %v1547_v60 = vsel %vm84_vm1, %v1891_v58, %v1545_v59 }
0x1387   :  { %2282 = vmatmul.mubr.msk.f32.vlgmr.msra.gmra.mrb[14].mxu0 %vm86_vm2, %v1547_v60 }
0x1388   :  { %2472 = vmatpush3.bf16.msra.mxu0 %v2816_v30  ;;  %2300 = vmatprep.mubr.msk.f32.mxu0 %vm2704_vm0, %v2705_v1 }
0x1389   :  { %2473 = vmatprep.subr.bf16.mxu0 %v2703_v0 }
0x138c   :  { %2475 = vmatpush3.bf16.msra.mxu0 %v2819_v32 }
0x138d   :  { %2476 = vmatprep.subr.bf16.mxu0 %v2703_v0 }
0x1390   :  { %2478 = vmatpush3.bf16.msra.mxu0 %v2823_v35 }
0x1391   :  { %2479 = vmatprep.subr.bf16.mxu0 %v2703_v0 }
0x1394   :  { %2481 = vmatpush3.bf16.msra.mxu0 %v2828_v39 }
0x1456   :  { %v1514_v61 = vpop.f32.mrb[12].mxu1 }
0x1457   :  { %v1515_v62 = vadd.f32 %v2863_v47, %v1514_v61  ;;  %v2268_v63 = vpop.f32.mrb[13].mxu1 }
0x1459   :  { %2603 = vtanh.f32 %v1515_v62  ;;  %v1890_v35 = vmul.f32 -1.442695, %v1515_v62 }
0x145a   :  { %v1617_v30 = vpop.f32.mrb[14].mxu0 }
0x145b   :  { %v1618_v1 = vadd.f32 %v2808_v13, %v1617_v30  ;;  %v2283_v2 = vpop.f32.mrb[15].mxu0 }
0x145d   :  { %2605 = vtanh.f32 %v1618_v1  ;;  %v1893_v4 = vmul.f32 -1.442695, %v1618_v1 }
0x145e   :  { %2607 = vpow2.f32 %v1890_v35 }
0x145f   :  { %2609 = vpow2.f32 %v1893_v4 }
0x1463   :  { %v2604_v3 = vpop.eup %2603 }
0x1464   :  { %1527 = vrot.lane.b32.xlu1 %v2604_v3, %s2706_s29 }
0x1467   :  { %v2606_v32 = vpop.eup %2605 }
0x1468   :  { %1630 = vrot.lane.b32.xlu0 %v2606_v32, %s2706_s29  ;;  %v2608_v39 = vpop.eup %2607 }
0x1469   :  { %v1521_v6 = vadd.f32 1.0, %v2608_v39  ;;  %v2610_v8 = vpop.eup %2609 }
0x146a   :  { %v1624_v9 = vadd.f32 1.0, %v2610_v8 }
0x146b   :  { %2611 = vrcp.f32 %v1521_v6 }
0x146c   :  { %2613 = vrcp.f32 %v1624_v9 }
0x1475   :  { %v2612_v11 = vpop.eup %2611 }
0x1476   :  { %v2614_v14 = vpop.eup %2613  ;;  %v1525_v17 = vmul.f32 %v2612_v11, %v3091_v44 }
0x1477   :  { %v1628_v20 = vmul.f32 %v2614_v14, %v3095_v48  ;;  %v1753_v48 = vld [vmem:[%s3174_s5 + $0x10] sm:$0xff] }
0x1478   :  { %v2486_v51 = vpack.c.bf16 %v1754_v50, %v1753_v48 }
0x14d6   :  { %v1528_v13 = vpop.permute.xlu1 %1527 }
0x14d7   :  { %v1530_v12 = vmul.f32 %v2612_v11, %v1528_v13 }
0x14d9   :  { %1532 = vrot.lane.b32.xlu1 %v1530_v12, %s2707_s30 }
0x14da   :  { %v1631_v15 = vpop.permute.xlu0 %1630 }
0x14db   :  { %v1633_v16 = vmul.f32 %v2614_v14, %v1631_v15 }
0x14dd   :  { %1635 = vrot.lane.b32.xlu0 %v1633_v16, %s2707_s30 }
0x154b   :  { %v1533_v18 = vpop.permute.xlu1 %1532 }
0x154c   :  { %v1535_v19 = vadd.f32 %v1533_v18, %v1525_v17 }
0x154e   :  { %2615 = vtanh.f32 %v1535_v19 }
0x154f   :  { %v1636_v5 = vpop.permute.xlu0 %1635 }
0x1550   :  { %v1638_v7 = vadd.f32 %v1636_v5, %v1628_v20 }
0x1552   :  { %2617 = vtanh.f32 %v1638_v7 }
0x1558   :  { %v2616_v21 = vpop.eup %2615 }
0x1559   :  { %1538 = vrot.lane.b32.xlu1 %v2616_v21, %s2706_s29 }
0x155c   :  { %v2618_v22 = vpop.eup %2617 }
0x155d   :  { %1641 = vrot.lane.b32.xlu0 %v2618_v22, %s2706_s29 }
0x15cb   :  { %v1539_v10 = vpop.permute.xlu1 %1538 }
0x15cc   :  { %v1541_v23 = vmul.f32 %v2612_v11, %v1539_v10 }
0x15ce   :  { %1650 = vrot.lane.b32.xlu0 %v1541_v23, %s2706_s29 }
0x15cf   :  { %v1642_v24 = vpop.permute.xlu0 %1641 }
0x15d0   :  { %v1644_v25 = vmul.f32 %v2614_v14, %v1642_v24 }
0x15d2   :  { %1646 = vrot.lane.b32.xlu1 %v1644_v25, %s2707_s30 }
0x1640   :  { %v1651_v26 = vpop.permute.xlu0 %1650 }
0x1644   :  { %v1647_v27 = vpop.permute.xlu1 %1646 }
0x1645   :  { %v1653_v28 = vsel %vm188_vm3, %v1647_v27, %v1651_v26 }
0x1646   :  { %2301 = vmatmul.mubr.msk.f32.vlgmr.msra.gmra.mrb[16].mxu0 %vm190_vm4, %v1653_v28 }
0x1719   :  { %v1723_v29 = vpop.f32.mrb[16].mxu0 }
0x171a   :  { %v1724_v31 = vadd.f32 %v2863_v47, %v1723_v29  ;;  %v2302_v33 = vpop.f32.mrb[17].mxu0  ;;  %v1751_v47 = vld [vmem:[%s3174_s5] sm:$0xff]  ;;  %s2709_s5 = smov [#allocation7]  }
0x171b   :  { %v2483_v49 = vpack.c.bf16 %v1752_v46, %v1751_v47  ;;  %s1845_s8 = sshll.u32 %s2709_s5, 4  ;;  %s1846_s8 = int_to_ptr.vmem [resolvable:$true] %s1845_s8 }
0x171c   :  { %2619 = vtanh.f32 %v1724_v31  ;;  %v1895_v36 = vmul.f32 -1.442695, %v1724_v31  ;;  %p2676_p3 = scmp.lt.s32.totalorder %s1846_s8, %s1846_s8 }
0x171d   :  { %2484 = vmatpush3.bf16.msra.mxu1 %v2483_v49 }
0x171e   :  { %2621 = vpow2.f32 %v1895_v36  ;;  %2485 = vmatprep.subr.bf16.mxu1 %v2703_v0 }
0x1721   :  { %2487 = vmatpush3.bf16.msra.mxu1 %v2486_v51 }
0x1726   :  { %v2620_v34 = vpop.eup %2619 }
0x1727   :  { %1736 = vrot.lane.b32.xlu1 %v2620_v34, %s2706_s29 }
0x1728   :  { %v2622_v37 = vpop.eup %2621 }
0x1729   :  { %v1730_v38 = vadd.f32 1.0, %v2622_v37 }
0x172b   :  { %2623 = vrcp.f32 %v1730_v38 }
0x1735   :  { %v2624_v40 = vpop.eup %2623 }
0x1736   :  { %v1734_v43 = vmul.f32 %v2624_v40, %v1535_v19 }
0x1799   :  { %v1737_v41 = vpop.permute.xlu1 %1736 }
0x179a   :  { %v1739_v42 = vmul.f32 %v2624_v40, %v1737_v41 }
0x179c   :  { %1741 = vrot.lane.b32.xlu0 %v1739_v42, %s2707_s30 }
0x180e   :  { %v1742_v44 = vpop.permute.xlu0 %1741 }
0x180f   :  { %v1744_v45 = vadd.f32 %v1742_v44, %v1734_v43 }
0x1811   :  { %2625 = vtanh.f32 %v1744_v45 }
0x181b   :  { %v2626_v52 = vpop.eup %2625 }
0x181c   :  { %1747 = vrot.lane.b32.xlu1 %v2626_v52, %s2706_s29  ;;  %s2671_s29 = scalar_lea.vmem %s1846_s8, 64 }
0x181d   :  { %p2672_p2 = scmp.ne.s32.totalorder %s1846_s8, %s2671_s29  ;;  %p2677_p4 = scmp.lt.s32.totalorder %s2671_s29, %s2671_s29 }
0x181f   :  { %p2678_p5 = por %p2677_p4, %p2676_p3 }
0x1821   :  { %p2679_p6 = pnand %p2678_p5, %p2672_p2 }
0x188e   :  { %v1748_v53 = vpop.permute.xlu1 %1747 }
0x188f   :  { %v1750_v54 = vmul.f32 %v2624_v40, %v1748_v53 }
0x1891   :  { %1763 = vrot.lane.b32.xlu0 %v1750_v54, %s2707_s30 }
0x1903   :  { %v1764_v55 = vpop.permute.xlu0 %1763 }
0x1904   :  { %2312 = vmatmul.mubr.msk.f32.vlgmr.msra.gmra.mrb[14].mxu1 %vm188_vm3, %v1764_v55 }
0x19d7   :  { %v1833_v57 = vpop.f32.mrb[14].mxu1 }
0x19d8   :  { %v1834_v0 = vadd.f32 %v1896_v56, %v1833_v57  ;;  %v2313_v58 = vpop.f32.mrb[15].mxu1 }
0x19da   :  { %1838 = vst.msk [vmem:[#allocation7] sm:$0xf] %vm1837_vm5, %v1834_v0 }
0x19db   :  { %2682 = shalt.err (!%p2679_p6)
}
0x19dc   :  { %s2683_s10 = scalar_lea.hbm %s3176_s7, 64 }
0x19dd   :  { %p2684_p7 = scmp.ne.s32.totalorder %s3176_s7, %s2683_s10  ;;  %p2687_p8 = scmp.lt.u32.totalorder %s2683_s10, %s3176_s7 }
0x19df   :  { %p2689_p9 = pnand %p2687_p8, %p2684_p7 }
0x19e1   :  { %2692 = shalt.err (!%p2689_p9)
}
0x19e2   :  { %1848 = dma.vmem_to_hbm [thread:$0]  %s1846_s8, 64, %s3176_s7, [#allocation4]  }
0x19e3   :  { %2697 = dma.done.wait [#allocation4], 64  }
0x19e4   :  { %2698 = vsyncadd [#allocation4], 4294967232 }
0x19e5   :  { %1852 = vsyncpa [#allocation3], 1 }
0x19e6   :  { %1853 = vsyncpa [#allocation6], 1 }
0x19e7   :  { %1854 = vsyncpa [#allocation4], 1 }

</bundles_post_ra>
